<compile_context>
chip_gen: v7x
topology: tpu7x:2x2x1
jax: 0.10.0
libtpu: 0.0.40
codegen_flags: <defaults>
</compile_context>

<pallas_src>
import jax
import jax.numpy as jnp
from jax.experimental import pallas as pl
from jax.experimental.pallas import tpu as pltpu

# ----------------------------- configuration --------------------------------
ALL_ENT = 32          # args.all_ent  (number of KG entities)
EVAL_ENT = 32         # eval_ent      (rows of shared entity embedding)
EVAL_REL = 8          # eval_rel      (number of DDI relation classes)
N_DIM = 16            # args.n_dim
L = 2                 # args.length
ALL_REL = 8           # synthetic unified relation space (max_relation_id+1)
R = 2 * ALL_REL + 1   # relation dimension of the KG tensors (=17)
B = 4                 # batch of (head, tail) pairs
N_EXP = 2             # number of experts
GATE_HIDDEN = 8       # args.gate_hidden
KG_NAMES = ["kg_a", "kg_b"]
K_HALF = B * N_DIM    # columns of one propagation direction (=64)
K2 = 2 * K_HALF       # both directions concatenated -> lane-dense 128


# ------------------------- fused expert propagation --------------------------
def _moe_prop_kernel(kg_ref, relin_ref, wblk_ref, bias_ref, hid0_ref,
                     out_ref, rhs_sc):
    """Both experts' full L-layer propagation, both directions batched.

    kg_ref   : (n_exp, n_ent, R*n_ent)  flattened KG, kg[e, i, r*n_ent+j] = KG_e[i,j,r]
    relin_ref: (n_exp, L, R, K2)        rel_in per expert/layer (tiled for both halves)
    wblk_ref : (n_exp, L, K2, K2)       block-diagonal per-layer Linear weight
    bias_ref : (n_exp, L, 1, K2)        tiled per-layer Linear bias
    hid0_ref : (n_ent, K2)              initial hidden state (head | tail seeded)
    out_ref  : (n_exp, n_ent, K2)       final hidden states
    rhs_sc   : (R*n_ent, K2) VMEM scratch for the collapsed rspmm rhs operand
    """
    n_exp, n_ent, _ = kg_ref.shape
    _, n_layer, n_rel, _ = relin_ref.shape

    for e in range(n_exp):                    # static unroll, tiny
        hid = hid0_ref[...]                   # (n_ent, K2), 4 vregs
        for l in range(n_layer):
            rel = relin_ref[e, l]             # (R, K2), ~3 vregs
            # rhs[r*n_ent + j, k] = rel[r, k] * hid[j, k] — written straight
            # into VMEM scratch (no 68-vreg live value, no reshape copy).
            for r in range(n_rel):
                rhs_sc[pl.ds(r * n_ent, n_ent), :] = rel[r:r + 1, :] * hid
            # generalized_rspmm collapsed to one MXU matmul; kg streamed from
            # its VMEM ref (not pinned live across layers).
            msg = jnp.dot(kg_ref[e], rhs_sc[...],
                          preferred_element_type=jnp.float32)      # (n_ent, K2)
            # block-diagonal Linear (kron(I_2B, W)) + ReLU, stays lane-dense.
            hid = jnp.maximum(
                jnp.dot(msg, wblk_ref[e, l],
                        preferred_element_type=jnp.float32) + bias_ref[e, l],
                0.0)
        out_ref[e] = hid


def fused_expert_propagation(kg_flat, rel_in, w_blk, b_tile, hid0):
    """kg_flat: (n_exp, n_ent, R*n_ent)  rel_in: (n_exp, L, R, K2)
       w_blk:  (n_exp, L, K2, K2)        b_tile: (n_exp, L, 1, K2)
       hid0:   (n_ent, K2)               -> (n_exp, n_ent, K2)"""
    n_exp, n_ent, _ = kg_flat.shape
    _, _, n_rel, k2 = rel_in.shape
    vmem = lambda: pl.BlockSpec(memory_space=pltpu.MemorySpace.VMEM)
    return pl.pallas_call(
        _moe_prop_kernel,
        out_shape=jax.ShapeDtypeStruct((n_exp, n_ent, k2), jnp.float32),
        in_specs=[vmem(), vmem(), vmem(), vmem(), vmem()],
        out_specs=vmem(),
        scratch_shapes=[pltpu.VMEM((n_rel * n_ent, k2), jnp.float32)],
    )(kg_flat, rel_in, w_blk, b_tile, hid0)


# ---------------------- one-time static preparation --------------------------
def prepare_statics(params, kg_dict, ddi_adj, training=False):
    """Everything that only depends on params / KGs (NOT on heads/tails):
       flattened KGs, block-diagonal Linear weights, tiled biases."""
    eye2b = jnp.eye(2 * B, dtype=jnp.float32)
    mats, w_blks, b_tiles = [], [], []
    for name in KG_NAMES:
        kg = kg_dict[name]
        if training:                               # add_ddi = self.training
            kg = kg + ddi_adj
        # kg_flat[i, r*n_ent + j] = KG[i, j, r]
        mats.append(jnp.transpose(kg, (0, 2, 1)).reshape(kg.shape[0], -1))
        p = params["experts"][name]
        w_blks.append(jnp.stack([jnp.kron(eye2b, p["lin_w"][l]) for l in range(L)]))
        b_tiles.append(jnp.stack([jnp.tile(p["lin_b"][l], (1, 2 * B)) for l in range(L)]))
    return {
        "kg_flat": jnp.stack(mats),      # (n_exp, n_ent, R*n_ent)
        "w_blk":   jnp.stack(w_blks),    # (n_exp, L, K2, K2)
        "b_tile":  jnp.stack(b_tiles),   # (n_exp, L, 1, K2)
    }


# ------------------------------ model forward ---------------------------------
@jax.jit
def moe_forward(params, statics, heads, tails):
    n_ent = ALL_ENT
    bn = heads.shape[0]

    h_emb = params["ent_emb"][heads]
    t_emb = params["ent_emb"][tails]
    ht = jnp.concatenate([h_emb, t_emb], axis=-1)                          # (B, 2D)

    # --- soft gate (tiny -> plain JAX, fused by XLA) ---
    g1 = jnp.maximum(ht @ params["gate_w1"] + params["gate_b1"], 0.0)
    gate_logits = g1 @ params["gate_w2"] + params["gate_b2"]
    alpha = jax.nn.softmax(gate_logits, axis=-1)                           # (B, n_exp)

    # --- initial hidden state via one-hot matmuls (no TPU scatter) ---
    h_oh = jax.nn.one_hot(heads, n_ent, dtype=jnp.float32)                 # (B, n_ent)
    t_oh = jax.nn.one_hot(tails, n_ent, dtype=jnp.float32)
    hid0_head = jnp.einsum("bn,bd->nbd", h_oh, h_emb)                      # (n_ent, B, D)
    hid0_tail = jnp.einsum("bn,bd->nbd", t_oh, t_emb)
    hid0 = jnp.concatenate([hid0_head, hid0_tail], axis=1)                 # (n_ent, 2B, D)
    hid0 = hid0.reshape(n_ent, 2 * bn * N_DIM)                             # (n_ent, K2)

    # --- per-expert relation inputs (depend on heads/tails -> per call) ---
    rel_ins = []
    for name in KG_NAMES:
        p = params["experts"][name]
        ri_l = []
        for l in range(L):
            z = jnp.maximum(ht @ p["rel_lin_w"][l] + p["rel_lin_b"][l], 0.0)    # (B, 5)
            rel_w = jax.nn.sigmoid(z @ p["attn_w"][l] + p["attn_b"][l])         # (B, R)
            rel_in = rel_w[:, :, None] * p["rel_kg"][l][None, :, :]             # (B, R, D)
            rel_in = jnp.transpose(rel_in, (1, 0, 2)).reshape(R, bn * N_DIM)    # (R, B*D)
            ri_l.append(jnp.concatenate([rel_in, rel_in], axis=1))              # (R, K2)
        rel_ins.append(jnp.stack(ri_l))
    rel_in_all = jnp.stack(rel_ins)                                        # (n_exp, L, R, K2)

    # --- one fused Pallas kernel: all experts, all layers, both directions ---
    hid_fin = fused_expert_propagation(statics["kg_flat"], rel_in_all,
                                       statics["w_blk"], statics["b_tile"],
                                       hid0)                               # (n_exp, n_ent, K2)
    hid_fin = hid_fin.reshape(N_EXP, n_ent, 2 * bn, N_DIM)
    head_half = hid_fin[:, :, :bn, :]        # head-seeded propagation
    tail_half = hid_fin[:, :, bn:, :]        # tail-seeded propagation

    # --- (entity, pair) gathers as one-hot einsums (no gather HLO) ---
    tail_hid = jnp.einsum("bn,enbd->ebd", t_oh, head_half)                 # (n_exp, B, D)
    head_hid = jnp.einsum("bn,enbd->ebd", h_oh, tail_half)                 # (n_exp, B, D)

    # --- expert heads (Wr) and soft mixture (tiny -> plain JAX) ---
    out = jnp.zeros((bn, EVAL_REL), jnp.float32)
    for e, name in enumerate(KG_NAMES):
        p = params["experts"][name]
        emb = jnp.concatenate([h_emb, t_emb, head_hid[e], tail_hid[e]], axis=1)  # (B, 4D)
        logits_e = emb @ p["Wr_w"] + p["Wr_b"]                                   # (B, eval_rel)
        out = out + alpha[:, e:e + 1] * logits_e
    return out


# ----------------------- pure-JAX reference (for check) ----------------------
def reference_forward(params, heads, tails, ddi_adj, kg_dict, training=False):
    hp = jax.lax.Precision.HIGHEST

    def lin(x, w, b):
        return x @ w + b

    h_emb = params["ent_emb"][heads]
    t_emb = params["ent_emb"][tails]
    ht = jnp.concatenate([h_emb, t_emb], -1)
    gate_logits = lin(jnp.maximum(lin(ht, params["gate_w1"], params["gate_b1"]), 0.0),
                      params["gate_w2"], params["gate_b2"])
    alpha = jax.nn.softmax(gate_logits, -1)

    outs = []
    for name in KG_NAMES:
        kg = kg_dict[name] + (ddi_adj if training else 0.0)
        p = params["experts"][name]
        rel_ins = []
        for l in range(L):
            z = jnp.maximum(lin(ht, p["rel_lin_w"][l], p["rel_lin_b"][l]), 0.0)
            rel_w = jax.nn.sigmoid(lin(z, p["attn_w"][l], p["attn_b"][l]))
            rel_in = (rel_w[:, :, None] * p["rel_kg"][l][None]).transpose(1, 0, 2)
            rel_ins.append(rel_in.reshape(R, B * N_DIM))

        def prop(idx, emb):
            hid = jnp.zeros((ALL_ENT, B, N_DIM), jnp.float32)
            hid = hid.at[idx, jnp.arange(B)].set(emb).reshape(ALL_ENT, -1)
            for l in range(L):
                msg = jnp.einsum("ijr,rk,jk->ik", kg, rel_ins[l], hid, precision=hp)
                hid = jnp.maximum(
                    jnp.dot(msg.reshape(ALL_ENT * B, N_DIM), p["lin_w"][l],
                            precision=hp) + p["lin_b"][l],
                    0.0).reshape(ALL_ENT, -1)
            return hid.reshape(ALL_ENT, B, N_DIM)

        tail_hid = prop(heads, h_emb)[tails, jnp.arange(B)]
        head_hid = prop(tails, t_emb)[heads, jnp.arange(B)]
        emb_cat = jnp.concatenate([h_emb, t_emb, head_hid, tail_hid], 1)
        outs.append(emb_cat @ p["Wr_w"] + p["Wr_b"])

    stack = jnp.stack(outs, 1)                               # (B, n_exp, eval_rel)
    return jnp.sum(alpha[:, :, None] * stack, 1)


# ------------------------------ parameter init --------------------------------
def init_params(key):
    keys = iter(jax.random.split(key, 64))

    def xavier(shape):
        fan_in, fan_out = shape
        limit = (6.0 / (fan_in + fan_out)) ** 0.5
        return jax.random.uniform(next(keys), shape, jnp.float32, -limit, limit)

    params = {
        "ent_emb": jax.random.normal(next(keys), (EVAL_ENT, N_DIM), jnp.float32),
        "gate_w1": xavier((2 * N_DIM, GATE_HIDDEN)),
        "gate_b1": jnp.zeros((1, GATE_HIDDEN), jnp.float32),
        "gate_w2": xavier((GATE_HIDDEN, N_EXP)),
        "gate_b2": jnp.zeros((1, N_EXP), jnp.float32),
        "experts": {},
    }
    for name in KG_NAMES:
        params["experts"][name] = {
            "rel_kg": [xavier((R, N_DIM)) for _ in range(L)],
            "lin_w": [xavier((N_DIM, N_DIM)) for _ in range(L)],
            "lin_b": [jnp.zeros((1, N_DIM), jnp.float32) for _ in range(L)],
            "rel_lin_w": [xavier((2 * N_DIM, 5)) for _ in range(L)],
            "rel_lin_b": [jnp.zeros((1, 5), jnp.float32) for _ in range(L)],
            "attn_w": [xavier((5, R)) for _ in range(L)],
            "attn_b": [jnp.zeros((1, R), jnp.float32) for _ in range(L)],
            "Wr_w": xavier((4 * N_DIM, EVAL_REL)),
            "Wr_b": jnp.zeros((1, EVAL_REL), jnp.float32),
        }
    return params


# ----------------------------------- main -------------------------------------
if __name__ == "__main__":
    key = jax.random.PRNGKey(0)
    kp, kh, kt, kg1, kg2, kdd = jax.random.split(key, 6)

    params = init_params(kp)
    heads = jax.random.randint(kh, (B,), 0, ALL_ENT)
    tails = jax.random.randint(kt, (B,), 0, ALL_ENT)
    kg_dict = {
        "kg_a": (jax.random.uniform(kg1, (ALL_ENT, ALL_ENT, R)) < 0.05).astype(jnp.float32),
        "kg_b": (jax.random.uniform(kg2, (ALL_ENT, ALL_ENT, R)) < 0.05).astype(jnp.float32),
    }
    ddi_adj = (jax.random.uniform(kdd, (ALL_ENT, ALL_ENT, R)) < 0.02).astype(jnp.float32)

    # All params-only / KG-only preparation happens once, outside the forward.
    # TODO(synk): training mode would require re-running prepare_statics with
    #             training=True so the ddi_adj add is reflected in kg_flat.
    statics = prepare_statics(params, kg_dict, ddi_adj, training=False)

    out = moe_forward(params, statics, heads, tails)
    out = jax.block_until_ready(out)

    ref = reference_forward(params, heads, tails, ddi_adj, kg_dict, training=False)
    assert out.shape == (B, EVAL_REL)
    assert jnp.allclose(out, ref, rtol=2e-3, atol=2e-3), (out, ref)
    print("KERNEL_OK")
</pallas_src>

<mosaic_0001>
module attributes {stable_mosaic.version = 11 : i64} {
  func.func @_moe_prop_kernel(%arg0: memref<2x32x544xf32, #tpu.memory_space<vmem>>, %arg1: memref<2x2x17x128xf32, #tpu.memory_space<vmem>>, %arg2: memref<2x2x128x128xf32, #tpu.memory_space<vmem>>, %arg3: memref<2x2x1x128xf32, #tpu.memory_space<vmem>>, %arg4: memref<32x128xf32, #tpu.memory_space<vmem>>, %arg5: memref<2x32x128xf32, #tpu.memory_space<vmem>>, %arg6: memref<544x128xf32, #tpu.memory_space<vmem>>) attributes {dimension_semantics = [], scalar_prefetch = 0 : i64, scratch_operands = 1 : i64, tpu.core_type = #tpu.core_type<tc>} {
    %c0 = arith.constant 0 : index
    %c0_0 = arith.constant 0 : index
    %0 = vector.load %arg4[%c0, %c0_0] : memref<32x128xf32, #tpu.memory_space<vmem>>, vector<32x128xf32>
    %c0_1 = arith.constant 0 : index
    %c0_2 = arith.constant 0 : index
    %c0_3 = arith.constant 0 : index
    %c0_4 = arith.constant 0 : index
    %1 = vector.load %arg1[%c0_1, %c0_2, %c0_3, %c0_4] : memref<2x2x17x128xf32, #tpu.memory_space<vmem>>, vector<1x1x17x128xf32>
    %2 = vector.shape_cast %1 : vector<1x1x17x128xf32> to vector<17x128xf32>
    %3 = vector.extract_strided_slice %2 {offsets = [0, 0], sizes = [1, 128], strides = [1, 1]} : vector<17x128xf32> to vector<1x128xf32>
    %4 = vector.broadcast %3 : vector<1x128xf32> to vector<32x128xf32>
    %5 = arith.mulf %4, %0 : vector<32x128xf32>
    %c0_5 = arith.constant 0 : index
    %c0_6 = arith.constant 0 : index
    %6 = vector.load %arg6[%c0_5, %c0_6] : memref<544x128xf32, #tpu.memory_space<vmem>>, vector<32x128xf32>
    tpu.vector_store %arg6[%c0_5, %c0_6], %5 {strides = array<i32>} : memref<544x128xf32, #tpu.memory_space<vmem>>, vector<32x128xf32>,
    %7 = vector.extract_strided_slice %2 {offsets = [1, 0], sizes = [1, 128], strides = [1, 1]} : vector<17x128xf32> to vector<1x128xf32>
    %8 = vector.broadcast %7 : vector<1x128xf32> to vector<32x128xf32>
    %9 = arith.mulf %8, %0 : vector<32x128xf32>
    %c32 = arith.constant 32 : index
    %c0_7 = arith.constant 0 : index
    %10 = vector.load %arg6[%c32, %c0_7] : memref<544x128xf32, #tpu.memory_space<vmem>>, vector<32x128xf32>
    tpu.vector_store %arg6[%c32, %c0_7], %9 {strides = array<i32>} : memref<544x128xf32, #tpu.memory_space<vmem>>, vector<32x128xf32>,
    %11 = vector.extract_strided_slice %2 {offsets = [2, 0], sizes = [1, 128], strides = [1, 1]} : vector<17x128xf32> to vector<1x128xf32>
    %12 = vector.broadcast %11 : vector<1x128xf32> to vector<32x128xf32>
    %13 = arith.mulf %12, %0 : vector<32x128xf32>
    %c64 = arith.constant 64 : index
    %c0_8 = arith.constant 0 : index
    %14 = vector.load %arg6[%c64, %c0_8] : memref<544x128xf32, #tpu.memory_space<vmem>>, vector<32x128xf32>
    tpu.vector_store %arg6[%c64, %c0_8], %13 {strides = array<i32>} : memref<544x128xf32, #tpu.memory_space<vmem>>, vector<32x128xf32>,
    %15 = vector.extract_strided_slice %2 {offsets = [3, 0], sizes = [1, 128], strides = [1, 1]} : vector<17x128xf32> to vector<1x128xf32>
    %16 = vector.broadcast %15 : vector<1x128xf32> to vector<32x128xf32>
    %17 = arith.mulf %16, %0 : vector<32x128xf32>
    %c96 = arith.constant 96 : index
    %c0_9 = arith.constant 0 : index
    %18 = vector.load %arg6[%c96, %c0_9] : memref<544x128xf32, #tpu.memory_space<vmem>>, vector<32x128xf32>
    tpu.vector_store %arg6[%c96, %c0_9], %17 {strides = array<i32>} : memref<544x128xf32, #tpu.memory_space<vmem>>, vector<32x128xf32>,
    %19 = vector.extract_strided_slice %2 {offsets = [4, 0], sizes = [1, 128], strides = [1, 1]} : vector<17x128xf32> to vector<1x128xf32>
    %20 = vector.broadcast %19 : vector<1x128xf32> to vector<32x128xf32>
    %21 = arith.mulf %20, %0 : vector<32x128xf32>
    %c128 = arith.constant 128 : index
    %c0_10 = arith.constant 0 : index
    %22 = vector.load %arg6[%c128, %c0_10] : memref<544x128xf32, #tpu.memory_space<vmem>>, vector<32x128xf32>
    tpu.vector_store %arg6[%c128, %c0_10], %21 {strides = array<i32>} : memref<544x128xf32, #tpu.memory_space<vmem>>, vector<32x128xf32>,
    %23 = vector.extract_strided_slice %2 {offsets = [5, 0], sizes = [1, 128], strides = [1, 1]} : vector<17x128xf32> to vector<1x128xf32>
    %24 = vector.broadcast %23 : vector<1x128xf32> to vector<32x128xf32>
    %25 = arith.mulf %24, %0 : vector<32x128xf32>
    %c160 = arith.constant 160 : index
    %c0_11 = arith.constant 0 : index
    %26 = vector.load %arg6[%c160, %c0_11] : memref<544x128xf32, #tpu.memory_space<vmem>>, vector<32x128xf32>
    tpu.vector_store %arg6[%c160, %c0_11], %25 {strides = array<i32>} : memref<544x128xf32, #tpu.memory_space<vmem>>, vector<32x128xf32>,
    %27 = vector.extract_strided_slice %2 {offsets = [6, 0], sizes = [1, 128], strides = [1, 1]} : vector<17x128xf32> to vector<1x128xf32>
    %28 = vector.broadcast %27 : vector<1x128xf32> to vector<32x128xf32>
    %29 = arith.mulf %28, %0 : vector<32x128xf32>
    %c192 = arith.constant 192 : index
    %c0_12 = arith.constant 0 : index
    %30 = vector.load %arg6[%c192, %c0_12] : memref<544x128xf32, #tpu.memory_space<vmem>>, vector<32x128xf32>
    tpu.vector_store %arg6[%c192, %c0_12], %29 {strides = array<i32>} : memref<544x128xf32, #tpu.memory_space<vmem>>, vector<32x128xf32>,
    %31 = vector.extract_strided_slice %2 {offsets = [7, 0], sizes = [1, 128], strides = [1, 1]} : vector<17x128xf32> to vector<1x128xf32>
    %32 = vector.broadcast %31 : vector<1x128xf32> to vector<32x128xf32>
    %33 = arith.mulf %32, %0 : vector<32x128xf32>
    %c224 = arith.constant 224 : index
    %c0_13 = arith.constant 0 : index
    %34 = vector.load %arg6[%c224, %c0_13] : memref<544x128xf32, #tpu.memory_space<vmem>>, vector<32x128xf32>
    tpu.vector_store %arg6[%c224, %c0_13], %33 {strides = array<i32>} : memref<544x128xf32, #tpu.memory_space<vmem>>, vector<32x128xf32>,
    %35 = vector.extract_strided_slice %2 {offsets = [8, 0], sizes = [1, 128], strides = [1, 1]} : vector<17x128xf32> to vector<1x128xf32>
    %36 = vector.broadcast %35 : vector<1x128xf32> to vector<32x128xf32>
    %37 = arith.mulf %36, %0 : vector<32x128xf32>
    %c256 = arith.constant 256 : index
    %c0_14 = arith.constant 0 : index
    %38 = vector.load %arg6[%c256, %c0_14] : memref<544x128xf32, #tpu.memory_space<vmem>>, vector<32x128xf32>
    tpu.vector_store %arg6[%c256, %c0_14], %37 {strides = array<i32>} : memref<544x128xf32, #tpu.memory_space<vmem>>, vector<32x128xf32>,
    %39 = vector.extract_strided_slice %2 {offsets = [9, 0], sizes = [1, 128], strides = [1, 1]} : vector<17x128xf32> to vector<1x128xf32>
    %40 = vector.broadcast %39 : vector<1x128xf32> to vector<32x128xf32>
    %41 = arith.mulf %40, %0 : vector<32x128xf32>
    %c288 = arith.constant 288 : index
    %c0_15 = arith.constant 0 : index
    %42 = vector.load %arg6[%c288, %c0_15] : memref<544x128xf32, #tpu.memory_space<vmem>>, vector<32x128xf32>
    tpu.vector_store %arg6[%c288, %c0_15], %41 {strides = array<i32>} : memref<544x128xf32, #tpu.memory_space<vmem>>, vector<32x128xf32>,
    %43 = vector.extract_strided_slice %2 {offsets = [10, 0], sizes = [1, 128], strides = [1, 1]} : vector<17x128xf32> to vector<1x128xf32>
    %44 = vector.broadcast %43 : vector<1x128xf32> to vector<32x128xf32>
    %45 = arith.mulf %44, %0 : vector<32x128xf32>
    %c320 = arith.constant 320 : index
    %c0_16 = arith.constant 0 : index
    %46 = vector.load %arg6[%c320, %c0_16] : memref<544x128xf32, #tpu.memory_space<vmem>>, vector<32x128xf32>
    tpu.vector_store %arg6[%c320, %c0_16], %45 {strides = array<i32>} : memref<544x128xf32, #tpu.memory_space<vmem>>, vector<32x128xf32>,
    %47 = vector.extract_strided_slice %2 {offsets = [11, 0], sizes = [1, 128], strides = [1, 1]} : vector<17x128xf32> to vector<1x128xf32>
    %48 = vector.broadcast %47 : vector<1x128xf32> to vector<32x128xf32>
    %49 = arith.mulf %48, %0 : vector<32x128xf32>
    %c352 = arith.constant 352 : index
    %c0_17 = arith.constant 0 : index
    %50 = vector.load %arg6[%c352, %c0_17] : memref<544x128xf32, #tpu.memory_space<vmem>>, vector<32x128xf32>
    tpu.vector_store %arg6[%c352, %c0_17], %49 {strides = array<i32>} : memref<544x128xf32, #tpu.memory_space<vmem>>, vector<32x128xf32>,
    %51 = vector.extract_strided_slice %2 {offsets = [12, 0], sizes = [1, 128], strides = [1, 1]} : vector<17x128xf32> to vector<1x128xf32>
    %52 = vector.broadcast %51 : vector<1x128xf32> to vector<32x128xf32>
    %53 = arith.mulf %52, %0 : vector<32x128xf32>
    %c384 = arith.constant 384 : index
    %c0_18 = arith.constant 0 : index
    %54 = vector.load %arg6[%c384, %c0_18] : memref<544x128xf32, #tpu.memory_space<vmem>>, vector<32x128xf32>
    tpu.vector_store %arg6[%c384, %c0_18], %53 {strides = array<i32>} : memref<544x128xf32, #tpu.memory_space<vmem>>, vector<32x128xf32>,
    %55 = vector.extract_strided_slice %2 {offsets = [13, 0], sizes = [1, 128], strides = [1, 1]} : vector<17x128xf32> to vector<1x128xf32>
    %56 = vector.broadcast %55 : vector<1x128xf32> to vector<32x128xf32>
    %57 = arith.mulf %56, %0 : vector<32x128xf32>
    %c416 = arith.constant 416 : index
    %c0_19 = arith.constant 0 : index
    %58 = vector.load %arg6[%c416, %c0_19] : memref<544x128xf32, #tpu.memory_space<vmem>>, vector<32x128xf32>
    tpu.vector_store %arg6[%c416, %c0_19], %57 {strides = array<i32>} : memref<544x128xf32, #tpu.memory_space<vmem>>, vector<32x128xf32>,
    %59 = vector.extract_strided_slice %2 {offsets = [14, 0], sizes = [1, 128], strides = [1, 1]} : vector<17x128xf32> to vector<1x128xf32>
    %60 = vector.broadcast %59 : vector<1x128xf32> to vector<32x128xf32>
    %61 = arith.mulf %60, %0 : vector<32x128xf32>
    %c448 = arith.constant 448 : index
    %c0_20 = arith.constant 0 : index
    %62 = vector.load %arg6[%c448, %c0_20] : memref<544x128xf32, #tpu.memory_space<vmem>>, vector<32x128xf32>
    tpu.vector_store %arg6[%c448, %c0_20], %61 {strides = array<i32>} : memref<544x128xf32, #tpu.memory_space<vmem>>, vector<32x128xf32>,
    %63 = vector.extract_strided_slice %2 {offsets = [15, 0], sizes = [1, 128], strides = [1, 1]} : vector<17x128xf32> to vector<1x128xf32>
    %64 = vector.broadcast %63 : vector<1x128xf32> to vector<32x128xf32>
    %65 = arith.mulf %64, %0 : vector<32x128xf32>
    %c480 = arith.constant 480 : index
    %c0_21 = arith.constant 0 : index
    %66 = vector.load %arg6[%c480, %c0_21] : memref<544x128xf32, #tpu.memory_space<vmem>>, vector<32x128xf32>
    tpu.vector_store %arg6[%c480, %c0_21], %65 {strides = array<i32>} : memref<544x128xf32, #tpu.memory_space<vmem>>, vector<32x128xf32>,
    %67 = vector.extract_strided_slice %2 {offsets = [16, 0], sizes = [1, 128], strides = [1, 1]} : vector<17x128xf32> to vector<1x128xf32>
    %68 = vector.broadcast %67 : vector<1x128xf32> to vector<32x128xf32>
    %69 = arith.mulf %68, %0 : vector<32x128xf32>
    %c512 = arith.constant 512 : index
    %c0_22 = arith.constant 0 : index
    %70 = vector.load %arg6[%c512, %c0_22] : memref<544x128xf32, #tpu.memory_space<vmem>>, vector<32x128xf32>
    tpu.vector_store %arg6[%c512, %c0_22], %69 {strides = array<i32>} : memref<544x128xf32, #tpu.memory_space<vmem>>, vector<32x128xf32>,
    %c0_23 = arith.constant 0 : index
    %c0_24 = arith.constant 0 : index
    %c0_25 = arith.constant 0 : index
    %71 = vector.load %arg0[%c0_23, %c0_24, %c0_25] : memref<2x32x544xf32, #tpu.memory_space<vmem>>, vector<1x32x544xf32>
    %72 = vector.shape_cast %71 : vector<1x32x544xf32> to vector<32x544xf32>
    %c0_26 = arith.constant 0 : index
    %c0_27 = arith.constant 0 : index
    %73 = vector.load %arg6[%c0_26, %c0_27] : memref<544x128xf32, #tpu.memory_space<vmem>>, vector<544x128xf32>
    %cst = arith.constant dense<0.000000e+00> : vector<32x128xf32>
    %74 = tpu.matmul %72, %73, %cst {dimension_numbers = #tpu.dot_dimension_numbers<[1], [0], [0], [1], [0, 0, 1, 1], [], []>} : vector<32x544xf32>, vector<544x128xf32>, vector<32x128xf32> -> vector<32x128xf32>
    %c0_28 = arith.constant 0 : index
    %c0_29 = arith.constant 0 : index
    %c0_30 = arith.constant 0 : index
    %c0_31 = arith.constant 0 : index
    %75 = vector.load %arg2[%c0_28, %c0_29, %c0_30, %c0_31] : memref<2x2x128x128xf32, #tpu.memory_space<vmem>>, vector<1x1x128x128xf32>
    %76 = vector.shape_cast %75 : vector<1x1x128x128xf32> to vector<128x128xf32>
    %cst_32 = arith.constant dense<0.000000e+00> : vector<32x128xf32>
    %77 = tpu.matmul %74, %76, %cst_32 {dimension_numbers = #tpu.dot_dimension_numbers<[1], [0], [0], [1], [0, 0, 1, 1], [], []>} : vector<32x128xf32>, vector<128x128xf32>, vector<32x128xf32> -> vector<32x128xf32>
    %c0_33 = arith.constant 0 : index
    %c0_34 = arith.constant 0 : index
    %c0_35 = arith.constant 0 : index
    %c0_36 = arith.constant 0 : index
    %78 = vector.load %arg3[%c0_33, %c0_34, %c0_35, %c0_36] : memref<2x2x1x128xf32, #tpu.memory_space<vmem>>, vector<1x1x1x128xf32>
    %79 = vector.shape_cast %78 : vector<1x1x1x128xf32> to vector<1x128xf32>
    %80 = vector.broadcast %79 : vector<1x128xf32> to vector<32x128xf32>
    %81 = arith.addf %77, %80 : vector<32x128xf32>
    %cst_37 = arith.constant 0.000000e+00 : f32
    %82 = vector.broadcast %cst_37 : f32 to vector<32x128xf32>
    %83 = arith.maximumf %81, %82 : vector<32x128xf32>
    %c0_38 = arith.constant 0 : index
    %c1 = arith.constant 1 : index
    %c0_39 = arith.constant 0 : index
    %c0_40 = arith.constant 0 : index
    %84 = vector.load %arg1[%c0_38, %c1, %c0_39, %c0_40] : memref<2x2x17x128xf32, #tpu.memory_space<vmem>>, vector<1x1x17x128xf32>
    %85 = vector.shape_cast %84 : vector<1x1x17x128xf32> to vector<17x128xf32>
    %86 = vector.extract_strided_slice %85 {offsets = [0, 0], sizes = [1, 128], strides = [1, 1]} : vector<17x128xf32> to vector<1x128xf32>
    %87 = vector.broadcast %86 : vector<1x128xf32> to vector<32x128xf32>
    %88 = arith.mulf %87, %83 : vector<32x128xf32>
    %c0_41 = arith.constant 0 : index
    %c0_42 = arith.constant 0 : index
    %89 = vector.load %arg6[%c0_41, %c0_42] : memref<544x128xf32, #tpu.memory_space<vmem>>, vector<32x128xf32>
    tpu.vector_store %arg6[%c0_41, %c0_42], %88 {strides = array<i32>} : memref<544x128xf32, #tpu.memory_space<vmem>>, vector<32x128xf32>,
    %90 = vector.extract_strided_slice %85 {offsets = [1, 0], sizes = [1, 128], strides = [1, 1]} : vector<17x128xf32> to vector<1x128xf32>
    %91 = vector.broadcast %90 : vector<1x128xf32> to vector<32x128xf32>
    %92 = arith.mulf %91, %83 : vector<32x128xf32>
    %c32_43 = arith.constant 32 : index
    %c0_44 = arith.constant 0 : index
    %93 = vector.load %arg6[%c32_43, %c0_44] : memref<544x128xf32, #tpu.memory_space<vmem>>, vector<32x128xf32>
    tpu.vector_store %arg6[%c32_43, %c0_44], %92 {strides = array<i32>} : memref<544x128xf32, #tpu.memory_space<vmem>>, vector<32x128xf32>,
    %94 = vector.extract_strided_slice %85 {offsets = [2, 0], sizes = [1, 128], strides = [1, 1]} : vector<17x128xf32> to vector<1x128xf32>
    %95 = vector.broadcast %94 : vector<1x128xf32> to vector<32x128xf32>
    %96 = arith.mulf %95, %83 : vector<32x128xf32>
    %c64_45 = arith.constant 64 : index
    %c0_46 = arith.constant 0 : index
    %97 = vector.load %arg6[%c64_45, %c0_46] : memref<544x128xf32, #tpu.memory_space<vmem>>, vector<32x128xf32>
    tpu.vector_store %arg6[%c64_45, %c0_46], %96 {strides = array<i32>} : memref<544x128xf32, #tpu.memory_space<vmem>>, vector<32x128xf32>,
    %98 = vector.extract_strided_slice %85 {offsets = [3, 0], sizes = [1, 128], strides = [1, 1]} : vector<17x128xf32> to vector<1x128xf32>
    %99 = vector.broadcast %98 : vector<1x128xf32> to vector<32x128xf32>
    %100 = arith.mulf %99, %83 : vector<32x128xf32>
    %c96_47 = arith.constant 96 : index
    %c0_48 = arith.constant 0 : index
    %101 = vector.load %arg6[%c96_47, %c0_48] : memref<544x128xf32, #tpu.memory_space<vmem>>, vector<32x128xf32>
    tpu.vector_store %arg6[%c96_47, %c0_48], %100 {strides = array<i32>} : memref<544x128xf32, #tpu.memory_space<vmem>>, vector<32x128xf32>,
    %102 = vector.extract_strided_slice %85 {offsets = [4, 0], sizes = [1, 128], strides = [1, 1]} : vector<17x128xf32> to vector<1x128xf32>
    %103 = vector.broadcast %102 : vector<1x128xf32> to vector<32x128xf32>
    %104 = arith.mulf %103, %83 : vector<32x128xf32>
    %c128_49 = arith.constant 128 : index
    %c0_50 = arith.constant 0 : index
    %105 = vector.load %arg6[%c128_49, %c0_50] : memref<544x128xf32, #tpu.memory_space<vmem>>, vector<32x128xf32>
    tpu.vector_store %arg6[%c128_49, %c0_50], %104 {strides = array<i32>} : memref<544x128xf32, #tpu.memory_space<vmem>>, vector<32x128xf32>,
    %106 = vector.extract_strided_slice %85 {offsets = [5, 0], sizes = [1, 128], strides = [1, 1]} : vector<17x128xf32> to vector<1x128xf32>
    %107 = vector.broadcast %106 : vector<1x128xf32> to vector<32x128xf32>
    %108 = arith.mulf %107, %83 : vector<32x128xf32>
    %c160_51 = arith.constant 160 : index
    %c0_52 = arith.constant 0 : index
    %109 = vector.load %arg6[%c160_51, %c0_52] : memref<544x128xf32, #tpu.memory_space<vmem>>, vector<32x128xf32>
    tpu.vector_store %arg6[%c160_51, %c0_52], %108 {strides = array<i32>} : memref<544x128xf32, #tpu.memory_space<vmem>>, vector<32x128xf32>,
    %110 = vector.extract_strided_slice %85 {offsets = [6, 0], sizes = [1, 128], strides = [1, 1]} : vector<17x128xf32> to vector<1x128xf32>
    %111 = vector.broadcast %110 : vector<1x128xf32> to vector<32x128xf32>
    %112 = arith.mulf %111, %83 : vector<32x128xf32>
    %c192_53 = arith.constant 192 : index
    %c0_54 = arith.constant 0 : index
    %113 = vector.load %arg6[%c192_53, %c0_54] : memref<544x128xf32, #tpu.memory_space<vmem>>, vector<32x128xf32>
    tpu.vector_store %arg6[%c192_53, %c0_54], %112 {strides = array<i32>} : memref<544x128xf32, #tpu.memory_space<vmem>>, vector<32x128xf32>,
    %114 = vector.extract_strided_slice %85 {offsets = [7, 0], sizes = [1, 128], strides = [1, 1]} : vector<17x128xf32> to vector<1x128xf32>
    %115 = vector.broadcast %114 : vector<1x128xf32> to vector<32x128xf32>
    %116 = arith.mulf %115, %83 : vector<32x128xf32>
    %c224_55 = arith.constant 224 : index
    %c0_56 = arith.constant 0 : index
    %117 = vector.load %arg6[%c224_55, %c0_56] : memref<544x128xf32, #tpu.memory_space<vmem>>, vector<32x128xf32>
    tpu.vector_store %arg6[%c224_55, %c0_56], %116 {strides = array<i32>} : memref<544x128xf32, #tpu.memory_space<vmem>>, vector<32x128xf32>,
    %118 = vector.extract_strided_slice %85 {offsets = [8, 0], sizes = [1, 128], strides = [1, 1]} : vector<17x128xf32> to vector<1x128xf32>
    %119 = vector.broadcast %118 : vector<1x128xf32> to vector<32x128xf32>
    %120 = arith.mulf %119, %83 : vector<32x128xf32>
    %c256_57 = arith.constant 256 : index
    %c0_58 = arith.constant 0 : index
    %121 = vector.load %arg6[%c256_57, %c0_58] : memref<544x128xf32, #tpu.memory_space<vmem>>, vector<32x128xf32>
    tpu.vector_store %arg6[%c256_57, %c0_58], %120 {strides = array<i32>} : memref<544x128xf32, #tpu.memory_space<vmem>>, vector<32x128xf32>,
    %122 = vector.extract_strided_slice %85 {offsets = [9, 0], sizes = [1, 128], strides = [1, 1]} : vector<17x128xf32> to vector<1x128xf32>
    %123 = vector.broadcast %122 : vector<1x128xf32> to vector<32x128xf32>
    %124 = arith.mulf %123, %83 : vector<32x128xf32>
    %c288_59 = arith.constant 288 : index
    %c0_60 = arith.constant 0 : index
    %125 = vector.load %arg6[%c288_59, %c0_60] : memref<544x128xf32, #tpu.memory_space<vmem>>, vector<32x128xf32>
    tpu.vector_store %arg6[%c288_59, %c0_60], %124 {strides = array<i32>} : memref<544x128xf32, #tpu.memory_space<vmem>>, vector<32x128xf32>,
    %126 = vector.extract_strided_slice %85 {offsets = [10, 0], sizes = [1, 128], strides = [1, 1]} : vector<17x128xf32> to vector<1x128xf32>
    %127 = vector.broadcast %126 : vector<1x128xf32> to vector<32x128xf32>
    %128 = arith.mulf %127, %83 : vector<32x128xf32>
    %c320_61 = arith.constant 320 : index
    %c0_62 = arith.constant 0 : index
    %129 = vector.load %arg6[%c320_61, %c0_62] : memref<544x128xf32, #tpu.memory_space<vmem>>, vector<32x128xf32>
    tpu.vector_store %arg6[%c320_61, %c0_62], %128 {strides = array<i32>} : memref<544x128xf32, #tpu.memory_space<vmem>>, vector<32x128xf32>,
    %130 = vector.extract_strided_slice %85 {offsets = [11, 0], sizes = [1, 128], strides = [1, 1]} : vector<17x128xf32> to vector<1x128xf32>
    %131 = vector.broadcast %130 : vector<1x128xf32> to vector<32x128xf32>
    %132 = arith.mulf %131, %83 : vector<32x128xf32>
    %c352_63 = arith.constant 352 : index
    %c0_64 = arith.constant 0 : index
    %133 = vector.load %arg6[%c352_63, %c0_64] : memref<544x128xf32, #tpu.memory_space<vmem>>, vector<32x128xf32>
    tpu.vector_store %arg6[%c352_63, %c0_64], %132 {strides = array<i32>} : memref<544x128xf32, #tpu.memory_space<vmem>>, vector<32x128xf32>,
    %134 = vector.extract_strided_slice %85 {offsets = [12, 0], sizes = [1, 128], strides = [1, 1]} : vector<17x128xf32> to vector<1x128xf32>
    %135 = vector.broadcast %134 : vector<1x128xf32> to vector<32x128xf32>
    %136 = arith.mulf %135, %83 : vector<32x128xf32>
    %c384_65 = arith.constant 384 : index
    %c0_66 = arith.constant 0 : index
    %137 = vector.load %arg6[%c384_65, %c0_66] : memref<544x128xf32, #tpu.memory_space<vmem>>, vector<32x128xf32>
    tpu.vector_store %arg6[%c384_65, %c0_66], %136 {strides = array<i32>} : memref<544x128xf32, #tpu.memory_space<vmem>>, vector<32x128xf32>,
    %138 = vector.extract_strided_slice %85 {offsets = [13, 0], sizes = [1, 128], strides = [1, 1]} : vector<17x128xf32> to vector<1x128xf32>
    %139 = vector.broadcast %138 : vector<1x128xf32> to vector<32x128xf32>
    %140 = arith.mulf %139, %83 : vector<32x128xf32>
    %c416_67 = arith.constant 416 : index
    %c0_68 = arith.constant 0 : index
    %141 = vector.load %arg6[%c416_67, %c0_68] : memref<544x128xf32, #tpu.memory_space<vmem>>, vector<32x128xf32>
    tpu.vector_store %arg6[%c416_67, %c0_68], %140 {strides = array<i32>} : memref<544x128xf32, #tpu.memory_space<vmem>>, vector<32x128xf32>,
    %142 = vector.extract_strided_slice %85 {offsets = [14, 0], sizes = [1, 128], strides = [1, 1]} : vector<17x128xf32> to vector<1x128xf32>
    %143 = vector.broadcast %142 : vector<1x128xf32> to vector<32x128xf32>
    %144 = arith.mulf %143, %83 : vector<32x128xf32>
    %c448_69 = arith.constant 448 : index
    %c0_70 = arith.constant 0 : index
    %145 = vector.load %arg6[%c448_69, %c0_70] : memref<544x128xf32, #tpu.memory_space<vmem>>, vector<32x128xf32>
    tpu.vector_store %arg6[%c448_69, %c0_70], %144 {strides = array<i32>} : memref<544x128xf32, #tpu.memory_space<vmem>>, vector<32x128xf32>,
    %146 = vector.extract_strided_slice %85 {offsets = [15, 0], sizes = [1, 128], strides = [1, 1]} : vector<17x128xf32> to vector<1x128xf32>
    %147 = vector.broadcast %146 : vector<1x128xf32> to vector<32x128xf32>
    %148 = arith.mulf %147, %83 : vector<32x128xf32>
    %c480_71 = arith.constant 480 : index
    %c0_72 = arith.constant 0 : index
    %149 = vector.load %arg6[%c480_71, %c0_72] : memref<544x128xf32, #tpu.memory_space<vmem>>, vector<32x128xf32>
    tpu.vector_store %arg6[%c480_71, %c0_72], %148 {strides = array<i32>} : memref<544x128xf32, #tpu.memory_space<vmem>>, vector<32x128xf32>,
    %150 = vector.extract_strided_slice %85 {offsets = [16, 0], sizes = [1, 128], strides = [1, 1]} : vector<17x128xf32> to vector<1x128xf32>
    %151 = vector.broadcast %150 : vector<1x128xf32> to vector<32x128xf32>
    %152 = arith.mulf %151, %83 : vector<32x128xf32>
    %c512_73 = arith.constant 512 : index
    %c0_74 = arith.constant 0 : index
    %153 = vector.load %arg6[%c512_73, %c0_74] : memref<544x128xf32, #tpu.memory_space<vmem>>, vector<32x128xf32>
    tpu.vector_store %arg6[%c512_73, %c0_74], %152 {strides = array<i32>} : memref<544x128xf32, #tpu.memory_space<vmem>>, vector<32x128xf32>,
    %c0_75 = arith.constant 0 : index
    %c0_76 = arith.constant 0 : index
    %c0_77 = arith.constant 0 : index
    %154 = vector.load %arg0[%c0_75, %c0_76, %c0_77] : memref<2x32x544xf32, #tpu.memory_space<vmem>>, vector<1x32x544xf32>
    %155 = vector.shape_cast %154 : vector<1x32x544xf32> to vector<32x544xf32>
    %c0_78 = arith.constant 0 : index
    %c0_79 = arith.constant 0 : index
    %156 = vector.load %arg6[%c0_78, %c0_79] : memref<544x128xf32, #tpu.memory_space<vmem>>, vector<544x128xf32>
    %cst_80 = arith.constant dense<0.000000e+00> : vector<32x128xf32>
    %157 = tpu.matmul %155, %156, %cst_80 {dimension_numbers = #tpu.dot_dimension_numbers<[1], [0], [0], [1], [0, 0, 1, 1], [], []>} : vector<32x544xf32>, vector<544x128xf32>, vector<32x128xf32> -> vector<32x128xf32>
    %c0_81 = arith.constant 0 : index
    %c1_82 = arith.constant 1 : index
    %c0_83 = arith.constant 0 : index
    %c0_84 = arith.constant 0 : index
    %158 = vector.load %arg2[%c0_81, %c1_82, %c0_83, %c0_84] : memref<2x2x128x128xf32, #tpu.memory_space<vmem>>, vector<1x1x128x128xf32>
    %159 = vector.shape_cast %158 : vector<1x1x128x128xf32> to vector<128x128xf32>
    %cst_85 = arith.constant dense<0.000000e+00> : vector<32x128xf32>
    %160 = tpu.matmul %157, %159, %cst_85 {dimension_numbers = #tpu.dot_dimension_numbers<[1], [0], [0], [1], [0, 0, 1, 1], [], []>} : vector<32x128xf32>, vector<128x128xf32>, vector<32x128xf32> -> vector<32x128xf32>
    %c0_86 = arith.constant 0 : index
    %c1_87 = arith.constant 1 : index
    %c0_88 = arith.constant 0 : index
    %c0_89 = arith.constant 0 : index
    %161 = vector.load %arg3[%c0_86, %c1_87, %c0_88, %c0_89] : memref<2x2x1x128xf32, #tpu.memory_space<vmem>>, vector<1x1x1x128xf32>
    %162 = vector.shape_cast %161 : vector<1x1x1x128xf32> to vector<1x128xf32>
    %163 = vector.broadcast %162 : vector<1x128xf32> to vector<32x128xf32>
    %164 = arith.addf %160, %163 : vector<32x128xf32>
    %cst_90 = arith.constant 0.000000e+00 : f32
    %165 = vector.broadcast %cst_90 : f32 to vector<32x128xf32>
    %166 = arith.maximumf %164, %165 : vector<32x128xf32>
    %c0_91 = arith.constant 0 : index
    %c0_92 = arith.constant 0 : index
    %c0_93 = arith.constant 0 : index
    %167 = vector.load %arg5[%c0_91, %c0_92, %c0_93] : memref<2x32x128xf32, #tpu.memory_space<vmem>>, vector<1x32x128xf32>
    %168 = vector.shape_cast %167 : vector<1x32x128xf32> to vector<32x128xf32>
    %169 = vector.shape_cast %166 : vector<32x128xf32> to vector<1x32x128xf32>
    tpu.vector_store %arg5[%c0_91, %c0_92, %c0_93], %169 {strides = array<i32>} : memref<2x32x128xf32, #tpu.memory_space<vmem>>, vector<1x32x128xf32>,
    %c0_94 = arith.constant 0 : index
    %c0_95 = arith.constant 0 : index
    %170 = vector.load %arg4[%c0_94, %c0_95] : memref<32x128xf32, #tpu.memory_space<vmem>>, vector<32x128xf32>
    %c1_96 = arith.constant 1 : index
    %c0_97 = arith.constant 0 : index
    %c0_98 = arith.constant 0 : index
    %c0_99 = arith.constant 0 : index
    %171 = vector.load %arg1[%c1_96, %c0_97, %c0_98, %c0_99] : memref<2x2x17x128xf32, #tpu.memory_space<vmem>>, vector<1x1x17x128xf32>
    %172 = vector.shape_cast %171 : vector<1x1x17x128xf32> to vector<17x128xf32>
    %173 = vector.extract_strided_slice %172 {offsets = [0, 0], sizes = [1, 128], strides = [1, 1]} : vector<17x128xf32> to vector<1x128xf32>
    %174 = vector.broadcast %173 : vector<1x128xf32> to vector<32x128xf32>
    %175 = arith.mulf %174, %170 : vector<32x128xf32>
    %c0_100 = arith.constant 0 : index
    %c0_101 = arith.constant 0 : index
    %176 = vector.load %arg6[%c0_100, %c0_101] : memref<544x128xf32, #tpu.memory_space<vmem>>, vector<32x128xf32>
    tpu.vector_store %arg6[%c0_100, %c0_101], %175 {strides = array<i32>} : memref<544x128xf32, #tpu.memory_space<vmem>>, vector<32x128xf32>,
    %177 = vector.extract_strided_slice %172 {offsets = [1, 0], sizes = [1, 128], strides = [1, 1]} : vector<17x128xf32> to vector<1x128xf32>
    %178 = vector.broadcast %177 : vector<1x128xf32> to vector<32x128xf32>
    %179 = arith.mulf %178, %170 : vector<32x128xf32>
    %c32_102 = arith.constant 32 : index
    %c0_103 = arith.constant 0 : index
    %180 = vector.load %arg6[%c32_102, %c0_103] : memref<544x128xf32, #tpu.memory_space<vmem>>, vector<32x128xf32>
    tpu.vector_store %arg6[%c32_102, %c0_103], %179 {strides = array<i32>} : memref<544x128xf32, #tpu.memory_space<vmem>>, vector<32x128xf32>,
    %181 = vector.extract_strided_slice %172 {offsets = [2, 0], sizes = [1, 128], strides = [1, 1]} : vector<17x128xf32> to vector<1x128xf32>
    %182 = vector.broadcast %181 : vector<1x128xf32> to vector<32x128xf32>
    %183 = arith.mulf %182, %170 : vector<32x128xf32>
    %c64_104 = arith.constant 64 : index
    %c0_105 = arith.constant 0 : index
    %184 = vector.load %arg6[%c64_104, %c0_105] : memref<544x128xf32, #tpu.memory_space<vmem>>, vector<32x128xf32>
    tpu.vector_store %arg6[%c64_104, %c0_105], %183 {strides = array<i32>} : memref<544x128xf32, #tpu.memory_space<vmem>>, vector<32x128xf32>,
    %185 = vector.extract_strided_slice %172 {offsets = [3, 0], sizes = [1, 128], strides = [1, 1]} : vector<17x128xf32> to vector<1x128xf32>
    %186 = vector.broadcast %185 : vector<1x128xf32> to vector<32x128xf32>
    %187 = arith.mulf %186, %170 : vector<32x128xf32>
    %c96_106 = arith.constant 96 : index
    %c0_107 = arith.constant 0 : index
    %188 = vector.load %arg6[%c96_106, %c0_107] : memref<544x128xf32, #tpu.memory_space<vmem>>, vector<32x128xf32>
    tpu.vector_store %arg6[%c96_106, %c0_107], %187 {strides = array<i32>} : memref<544x128xf32, #tpu.memory_space<vmem>>, vector<32x128xf32>,
    %189 = vector.extract_strided_slice %172 {offsets = [4, 0], sizes = [1, 128], strides = [1, 1]} : vector<17x128xf32> to vector<1x128xf32>
    %190 = vector.broadcast %189 : vector<1x128xf32> to vector<32x128xf32>
    %191 = arith.mulf %190, %170 : vector<32x128xf32>
    %c128_108 = arith.constant 128 : index
    %c0_109 = arith.constant 0 : index
    %192 = vector.load %arg6[%c128_108, %c0_109] : memref<544x128xf32, #tpu.memory_space<vmem>>, vector<32x128xf32>
    tpu.vector_store %arg6[%c128_108, %c0_109], %191 {strides = array<i32>} : memref<544x128xf32, #tpu.memory_space<vmem>>, vector<32x128xf32>,
    %193 = vector.extract_strided_slice %172 {offsets = [5, 0], sizes = [1, 128], strides = [1, 1]} : vector<17x128xf32> to vector<1x128xf32>
    %194 = vector.broadcast %193 : vector<1x128xf32> to vector<32x128xf32>
    %195 = arith.mulf %194, %170 : vector<32x128xf32>
    %c160_110 = arith.constant 160 : index
    %c0_111 = arith.constant 0 : index
    %196 = vector.load %arg6[%c160_110, %c0_111] : memref<544x128xf32, #tpu.memory_space<vmem>>, vector<32x128xf32>
    tpu.vector_store %arg6[%c160_110, %c0_111], %195 {strides = array<i32>} : memref<544x128xf32, #tpu.memory_space<vmem>>, vector<32x128xf32>,
    %197 = vector.extract_strided_slice %172 {offsets = [6, 0], sizes = [1, 128], strides = [1, 1]} : vector<17x128xf32> to vector<1x128xf32>
    %198 = vector.broadcast %197 : vector<1x128xf32> to vector<32x128xf32>
    %199 = arith.mulf %198, %170 : vector<32x128xf32>
    %c192_112 = arith.constant 192 : index
    %c0_113 = arith.constant 0 : index
    %200 = vector.load %arg6[%c192_112, %c0_113] : memref<544x128xf32, #tpu.memory_space<vmem>>, vector<32x128xf32>
    tpu.vector_store %arg6[%c192_112, %c0_113], %199 {strides = array<i32>} : memref<544x128xf32, #tpu.memory_space<vmem>>, vector<32x128xf32>,
    %201 = vector.extract_strided_slice %172 {offsets = [7, 0], sizes = [1, 128], strides = [1, 1]} : vector<17x128xf32> to vector<1x128xf32>
    %202 = vector.broadcast %201 : vector<1x128xf32> to vector<32x128xf32>
    %203 = arith.mulf %202, %170 : vector<32x128xf32>
    %c224_114 = arith.constant 224 : index
    %c0_115 = arith.constant 0 : index
    %204 = vector.load %arg6[%c224_114, %c0_115] : memref<544x128xf32, #tpu.memory_space<vmem>>, vector<32x128xf32>
    tpu.vector_store %arg6[%c224_114, %c0_115], %203 {strides = array<i32>} : memref<544x128xf32, #tpu.memory_space<vmem>>, vector<32x128xf32>,
    %205 = vector.extract_strided_slice %172 {offsets = [8, 0], sizes = [1, 128], strides = [1, 1]} : vector<17x128xf32> to vector<1x128xf32>
    %206 = vector.broadcast %205 : vector<1x128xf32> to vector<32x128xf32>
    %207 = arith.mulf %206, %170 : vector<32x128xf32>
    %c256_116 = arith.constant 256 : index
    %c0_117 = arith.constant 0 : index
    %208 = vector.load %arg6[%c256_116, %c0_117] : memref<544x128xf32, #tpu.memory_space<vmem>>, vector<32x128xf32>
    tpu.vector_store %arg6[%c256_116, %c0_117], %207 {strides = array<i32>} : memref<544x128xf32, #tpu.memory_space<vmem>>, vector<32x128xf32>,
    %209 = vector.extract_strided_slice %172 {offsets = [9, 0], sizes = [1, 128], strides = [1, 1]} : vector<17x128xf32> to vector<1x128xf32>
    %210 = vector.broadcast %209 : vector<1x128xf32> to vector<32x128xf32>
    %211 = arith.mulf %210, %170 : vector<32x128xf32>
    %c288_118 = arith.constant 288 : index
    %c0_119 = arith.constant 0 : index
    %212 = vector.load %arg6[%c288_118, %c0_119] : memref<544x128xf32, #tpu.memory_space<vmem>>, vector<32x128xf32>
    tpu.vector_store %arg6[%c288_118, %c0_119], %211 {strides = array<i32>} : memref<544x128xf32, #tpu.memory_space<vmem>>, vector<32x128xf32>,
    %213 = vector.extract_strided_slice %172 {offsets = [10, 0], sizes = [1, 128], strides = [1, 1]} : vector<17x128xf32> to vector<1x128xf32>
    %214 = vector.broadcast %213 : vector<1x128xf32> to vector<32x128xf32>
    %215 = arith.mulf %214, %170 : vector<32x128xf32>
    %c320_120 = arith.constant 320 : index
    %c0_121 = arith.constant 0 : index
    %216 = vector.load %arg6[%c320_120, %c0_121] : memref<544x128xf32, #tpu.memory_space<vmem>>, vector<32x128xf32>
    tpu.vector_store %arg6[%c320_120, %c0_121], %215 {strides = array<i32>} : memref<544x128xf32, #tpu.memory_space<vmem>>, vector<32x128xf32>,
    %217 = vector.extract_strided_slice %172 {offsets = [11, 0], sizes = [1, 128], strides = [1, 1]} : vector<17x128xf32> to vector<1x128xf32>
    %218 = vector.broadcast %217 : vector<1x128xf32> to vector<32x128xf32>
    %219 = arith.mulf %218, %170 : vector<32x128xf32>
    %c352_122 = arith.constant 352 : index
    %c0_123 = arith.constant 0 : index
    %220 = vector.load %arg6[%c352_122, %c0_123] : memref<544x128xf32, #tpu.memory_space<vmem>>, vector<32x128xf32>
    tpu.vector_store %arg6[%c352_122, %c0_123], %219 {strides = array<i32>} : memref<544x128xf32, #tpu.memory_space<vmem>>, vector<32x128xf32>,
    %221 = vector.extract_strided_slice %172 {offsets = [12, 0], sizes = [1, 128], strides = [1, 1]} : vector<17x128xf32> to vector<1x128xf32>
    %222 = vector.broadcast %221 : vector<1x128xf32> to vector<32x128xf32>
    %223 = arith.mulf %222, %170 : vector<32x128xf32>
    %c384_124 = arith.constant 384 : index
    %c0_125 = arith.constant 0 : index
    %224 = vector.load %arg6[%c384_124, %c0_125] : memref<544x128xf32, #tpu.memory_space<vmem>>, vector<32x128xf32>
    tpu.vector_store %arg6[%c384_124, %c0_125], %223 {strides = array<i32>} : memref<544x128xf32, #tpu.memory_space<vmem>>, vector<32x128xf32>,
    %225 = vector.extract_strided_slice %172 {offsets = [13, 0], sizes = [1, 128], strides = [1, 1]} : vector<17x128xf32> to vector<1x128xf32>
    %226 = vector.broadcast %225 : vector<1x128xf32> to vector<32x128xf32>
    %227 = arith.mulf %226, %170 : vector<32x128xf32>
    %c416_126 = arith.constant 416 : index
    %c0_127 = arith.constant 0 : index
    %228 = vector.load %arg6[%c416_126, %c0_127] : memref<544x128xf32, #tpu.memory_space<vmem>>, vector<32x128xf32>
    tpu.vector_store %arg6[%c416_126, %c0_127], %227 {strides = array<i32>} : memref<544x128xf32, #tpu.memory_space<vmem>>, vector<32x128xf32>,
    %229 = vector.extract_strided_slice %172 {offsets = [14, 0], sizes = [1, 128], strides = [1, 1]} : vector<17x128xf32> to vector<1x128xf32>
    %230 = vector.broadcast %229 : vector<1x128xf32> to vector<32x128xf32>
    %231 = arith.mulf %230, %170 : vector<32x128xf32>
    %c448_128 = arith.constant 448 : index
    %c0_129 = arith.constant 0 : index
    %232 = vector.load %arg6[%c448_128, %c0_129] : memref<544x128xf32, #tpu.memory_space<vmem>>, vector<32x128xf32>
    tpu.vector_store %arg6[%c448_128, %c0_129], %231 {strides = array<i32>} : memref<544x128xf32, #tpu.memory_space<vmem>>, vector<32x128xf32>,
    %233 = vector.extract_strided_slice %172 {offsets = [15, 0], sizes = [1, 128], strides = [1, 1]} : vector<17x128xf32> to vector<1x128xf32>
    %234 = vector.broadcast %233 : vector<1x128xf32> to vector<32x128xf32>
    %235 = arith.mulf %234, %170 : vector<32x128xf32>
    %c480_130 = arith.constant 480 : index
    %c0_131 = arith.constant 0 : index
    %236 = vector.load %arg6[%c480_130, %c0_131] : memref<544x128xf32, #tpu.memory_space<vmem>>, vector<32x128xf32>
    tpu.vector_store %arg6[%c480_130, %c0_131], %235 {strides = array<i32>} : memref<544x128xf32, #tpu.memory_space<vmem>>, vector<32x128xf32>,
    %237 = vector.extract_strided_slice %172 {offsets = [16, 0], sizes = [1, 128], strides = [1, 1]} : vector<17x128xf32> to vector<1x128xf32>
    %238 = vector.broadcast %237 : vector<1x128xf32> to vector<32x128xf32>
    %239 = arith.mulf %238, %170 : vector<32x128xf32>
    %c512_132 = arith.constant 512 : index
    %c0_133 = arith.constant 0 : index
    %240 = vector.load %arg6[%c512_132, %c0_133] : memref<544x128xf32, #tpu.memory_space<vmem>>, vector<32x128xf32>
    tpu.vector_store %arg6[%c512_132, %c0_133], %239 {strides = array<i32>} : memref<544x128xf32, #tpu.memory_space<vmem>>, vector<32x128xf32>,
    %c1_134 = arith.constant 1 : index
    %c0_135 = arith.constant 0 : index
    %c0_136 = arith.constant 0 : index
    %241 = vector.load %arg0[%c1_134, %c0_135, %c0_136] : memref<2x32x544xf32, #tpu.memory_space<vmem>>, vector<1x32x544xf32>
    %242 = vector.shape_cast %241 : vector<1x32x544xf32> to vector<32x544xf32>
    %c0_137 = arith.constant 0 : index
    %c0_138 = arith.constant 0 : index
    %243 = vector.load %arg6[%c0_137, %c0_138] : memref<544x128xf32, #tpu.memory_space<vmem>>, vector<544x128xf32>
    %cst_139 = arith.constant dense<0.000000e+00> : vector<32x128xf32>
    %244 = tpu.matmul %242, %243, %cst_139 {dimension_numbers = #tpu.dot_dimension_numbers<[1], [0], [0], [1], [0, 0, 1, 1], [], []>} : vector<32x544xf32>, vector<544x128xf32>, vector<32x128xf32> -> vector<32x128xf32>
    %c1_140 = arith.constant 1 : index
    %c0_141 = arith.constant 0 : index
    %c0_142 = arith.constant 0 : index
    %c0_143 = arith.constant 0 : index
    %245 = vector.load %arg2[%c1_140, %c0_141, %c0_142, %c0_143] : memref<2x2x128x128xf32, #tpu.memory_space<vmem>>, vector<1x1x128x128xf32>
    %246 = vector.shape_cast %245 : vector<1x1x128x128xf32> to vector<128x128xf32>
    %cst_144 = arith.constant dense<0.000000e+00> : vector<32x128xf32>
    %247 = tpu.matmul %244, %246, %cst_144 {dimension_numbers = #tpu.dot_dimension_numbers<[1], [0], [0], [1], [0, 0, 1, 1], [], []>} : vector<32x128xf32>, vector<128x128xf32>, vector<32x128xf32> -> vector<32x128xf32>
    %c1_145 = arith.constant 1 : index
    %c0_146 = arith.constant 0 : index
    %c0_147 = arith.constant 0 : index
    %c0_148 = arith.constant 0 : index
    %248 = vector.load %arg3[%c1_145, %c0_146, %c0_147, %c0_148] : memref<2x2x1x128xf32, #tpu.memory_space<vmem>>, vector<1x1x1x128xf32>
    %249 = vector.shape_cast %248 : vector<1x1x1x128xf32> to vector<1x128xf32>
    %250 = vector.broadcast %249 : vector<1x128xf32> to vector<32x128xf32>
    %251 = arith.addf %247, %250 : vector<32x128xf32>
    %cst_149 = arith.constant 0.000000e+00 : f32
    %252 = vector.broadcast %cst_149 : f32 to vector<32x128xf32>
    %253 = arith.maximumf %251, %252 : vector<32x128xf32>
    %c1_150 = arith.constant 1 : index
    %c1_151 = arith.constant 1 : index
    %c0_152 = arith.constant 0 : index
    %c0_153 = arith.constant 0 : index
    %254 = vector.load %arg1[%c1_150, %c1_151, %c0_152, %c0_153] : memref<2x2x17x128xf32, #tpu.memory_space<vmem>>, vector<1x1x17x128xf32>
    %255 = vector.shape_cast %254 : vector<1x1x17x128xf32> to vector<17x128xf32>
    %256 = vector.extract_strided_slice %255 {offsets = [0, 0], sizes = [1, 128], strides = [1, 1]} : vector<17x128xf32> to vector<1x128xf32>
    %257 = vector.broadcast %256 : vector<1x128xf32> to vector<32x128xf32>
    %258 = arith.mulf %257, %253 : vector<32x128xf32>
    %c0_154 = arith.constant 0 : index
    %c0_155 = arith.constant 0 : index
    %259 = vector.load %arg6[%c0_154, %c0_155] : memref<544x128xf32, #tpu.memory_space<vmem>>, vector<32x128xf32>
    tpu.vector_store %arg6[%c0_154, %c0_155], %258 {strides = array<i32>} : memref<544x128xf32, #tpu.memory_space<vmem>>, vector<32x128xf32>,
    %260 = vector.extract_strided_slice %255 {offsets = [1, 0], sizes = [1, 128], strides = [1, 1]} : vector<17x128xf32> to vector<1x128xf32>
    %261 = vector.broadcast %260 : vector<1x128xf32> to vector<32x128xf32>
    %262 = arith.mulf %261, %253 : vector<32x128xf32>
    %c32_156 = arith.constant 32 : index
    %c0_157 = arith.constant 0 : index
    %263 = vector.load %arg6[%c32_156, %c0_157] : memref<544x128xf32, #tpu.memory_space<vmem>>, vector<32x128xf32>
    tpu.vector_store %arg6[%c32_156, %c0_157], %262 {strides = array<i32>} : memref<544x128xf32, #tpu.memory_space<vmem>>, vector<32x128xf32>,
    %264 = vector.extract_strided_slice %255 {offsets = [2, 0], sizes = [1, 128], strides = [1, 1]} : vector<17x128xf32> to vector<1x128xf32>
    %265 = vector.broadcast %264 : vector<1x128xf32> to vector<32x128xf32>
    %266 = arith.mulf %265, %253 : vector<32x128xf32>
    %c64_158 = arith.constant 64 : index
    %c0_159 = arith.constant 0 : index
    %267 = vector.load %arg6[%c64_158, %c0_159] : memref<544x128xf32, #tpu.memory_space<vmem>>, vector<32x128xf32>
    tpu.vector_store %arg6[%c64_158, %c0_159], %266 {strides = array<i32>} : memref<544x128xf32, #tpu.memory_space<vmem>>, vector<32x128xf32>,
    %268 = vector.extract_strided_slice %255 {offsets = [3, 0], sizes = [1, 128], strides = [1, 1]} : vector<17x128xf32> to vector<1x128xf32>
    %269 = vector.broadcast %268 : vector<1x128xf32> to vector<32x128xf32>
    %270 = arith.mulf %269, %253 : vector<32x128xf32>
    %c96_160 = arith.constant 96 : index
    %c0_161 = arith.constant 0 : index
    %271 = vector.load %arg6[%c96_160, %c0_161] : memref<544x128xf32, #tpu.memory_space<vmem>>, vector<32x128xf32>
    tpu.vector_store %arg6[%c96_160, %c0_161], %270 {strides = array<i32>} : memref<544x128xf32, #tpu.memory_space<vmem>>, vector<32x128xf32>,
    %272 = vector.extract_strided_slice %255 {offsets = [4, 0], sizes = [1, 128], strides = [1, 1]} : vector<17x128xf32> to vector<1x128xf32>
    %273 = vector.broadcast %272 : vector<1x128xf32> to vector<32x128xf32>
    %274 = arith.mulf %273, %253 : vector<32x128xf32>
    %c128_162 = arith.constant 128 : index
    %c0_163 = arith.constant 0 : index
    %275 = vector.load %arg6[%c128_162, %c0_163] : memref<544x128xf32, #tpu.memory_space<vmem>>, vector<32x128xf32>
    tpu.vector_store %arg6[%c128_162, %c0_163], %274 {strides = array<i32>} : memref<544x128xf32, #tpu.memory_space<vmem>>, vector<32x128xf32>,
    %276 = vector.extract_strided_slice %255 {offsets = [5, 0], sizes = [1, 128], strides = [1, 1]} : vector<17x128xf32> to vector<1x128xf32>
    %277 = vector.broadcast %276 : vector<1x128xf32> to vector<32x128xf32>
    %278 = arith.mulf %277, %253 : vector<32x128xf32>
    %c160_164 = arith.constant 160 : index
    %c0_165 = arith.constant 0 : index
    %279 = vector.load %arg6[%c160_164, %c0_165] : memref<544x128xf32, #tpu.memory_space<vmem>>, vector<32x128xf32>
    tpu.vector_store %arg6[%c160_164, %c0_165], %278 {strides = array<i32>} : memref<544x128xf32, #tpu.memory_space<vmem>>, vector<32x128xf32>,
    %280 = vector.extract_strided_slice %255 {offsets = [6, 0], sizes = [1, 128], strides = [1, 1]} : vector<17x128xf32> to vector<1x128xf32>
    %281 = vector.broadcast %280 : vector<1x128xf32> to vector<32x128xf32>
    %282 = arith.mulf %281, %253 : vector<32x128xf32>
    %c192_166 = arith.constant 192 : index
    %c0_167 = arith.constant 0 : index
    %283 = vector.load %arg6[%c192_166, %c0_167] : memref<544x128xf32, #tpu.memory_space<vmem>>, vector<32x128xf32>
    tpu.vector_store %arg6[%c192_166, %c0_167], %282 {strides = array<i32>} : memref<544x128xf32, #tpu.memory_space<vmem>>, vector<32x128xf32>,
    %284 = vector.extract_strided_slice %255 {offsets = [7, 0], sizes = [1, 128], strides = [1, 1]} : vector<17x128xf32> to vector<1x128xf32>
    %285 = vector.broadcast %284 : vector<1x128xf32> to vector<32x128xf32>
    %286 = arith.mulf %285, %253 : vector<32x128xf32>
    %c224_168 = arith.constant 224 : index
    %c0_169 = arith.constant 0 : index
    %287 = vector.load %arg6[%c224_168, %c0_169] : memref<544x128xf32, #tpu.memory_space<vmem>>, vector<32x128xf32>
    tpu.vector_store %arg6[%c224_168, %c0_169], %286 {strides = array<i32>} : memref<544x128xf32, #tpu.memory_space<vmem>>, vector<32x128xf32>,
    %288 = vector.extract_strided_slice %255 {offsets = [8, 0], sizes = [1, 128], strides = [1, 1]} : vector<17x128xf32> to vector<1x128xf32>
    %289 = vector.broadcast %288 : vector<1x128xf32> to vector<32x128xf32>
    %290 = arith.mulf %289, %253 : vector<32x128xf32>
    %c256_170 = arith.constant 256 : index
    %c0_171 = arith.constant 0 : index
    %291 = vector.load %arg6[%c256_170, %c0_171] : memref<544x128xf32, #tpu.memory_space<vmem>>, vector<32x128xf32>
    tpu.vector_store %arg6[%c256_170, %c0_171], %290 {strides = array<i32>} : memref<544x128xf32, #tpu.memory_space<vmem>>, vector<32x128xf32>,
    %292 = vector.extract_strided_slice %255 {offsets = [9, 0], sizes = [1, 128], strides = [1, 1]} : vector<17x128xf32> to vector<1x128xf32>
    %293 = vector.broadcast %292 : vector<1x128xf32> to vector<32x128xf32>
    %294 = arith.mulf %293, %253 : vector<32x128xf32>
    %c288_172 = arith.constant 288 : index
    %c0_173 = arith.constant 0 : index
    %295 = vector.load %arg6[%c288_172, %c0_173] : memref<544x128xf32, #tpu.memory_space<vmem>>, vector<32x128xf32>
    tpu.vector_store %arg6[%c288_172, %c0_173], %294 {strides = array<i32>} : memref<544x128xf32, #tpu.memory_space<vmem>>, vector<32x128xf32>,
    %296 = vector.extract_strided_slice %255 {offsets = [10, 0], sizes = [1, 128], strides = [1, 1]} : vector<17x128xf32> to vector<1x128xf32>
    %297 = vector.broadcast %296 : vector<1x128xf32> to vector<32x128xf32>
    %298 = arith.mulf %297, %253 : vector<32x128xf32>
    %c320_174 = arith.constant 320 : index
    %c0_175 = arith.constant 0 : index
    %299 = vector.load %arg6[%c320_174, %c0_175] : memref<544x128xf32, #tpu.memory_space<vmem>>, vector<32x128xf32>
    tpu.vector_store %arg6[%c320_174, %c0_175], %298 {strides = array<i32>} : memref<544x128xf32, #tpu.memory_space<vmem>>, vector<32x128xf32>,
    %300 = vector.extract_strided_slice %255 {offsets = [11, 0], sizes = [1, 128], strides = [1, 1]} : vector<17x128xf32> to vector<1x128xf32>
    %301 = vector.broadcast %300 : vector<1x128xf32> to vector<32x128xf32>
    %302 = arith.mulf %301, %253 : vector<32x128xf32>
    %c352_176 = arith.constant 352 : index
    %c0_177 = arith.constant 0 : index
    %303 = vector.load %arg6[%c352_176, %c0_177] : memref<544x128xf32, #tpu.memory_space<vmem>>, vector<32x128xf32>
    tpu.vector_store %arg6[%c352_176, %c0_177], %302 {strides = array<i32>} : memref<544x128xf32, #tpu.memory_space<vmem>>, vector<32x128xf32>,
    %304 = vector.extract_strided_slice %255 {offsets = [12, 0], sizes = [1, 128], strides = [1, 1]} : vector<17x128xf32> to vector<1x128xf32>
    %305 = vector.broadcast %304 : vector<1x128xf32> to vector<32x128xf32>
    %306 = arith.mulf %305, %253 : vector<32x128xf32>
    %c384_178 = arith.constant 384 : index
    %c0_179 = arith.constant 0 : index
    %307 = vector.load %arg6[%c384_178, %c0_179] : memref<544x128xf32, #tpu.memory_space<vmem>>, vector<32x128xf32>
    tpu.vector_store %arg6[%c384_178, %c0_179], %306 {strides = array<i32>} : memref<544x128xf32, #tpu.memory_space<vmem>>, vector<32x128xf32>,
    %308 = vector.extract_strided_slice %255 {offsets = [13, 0], sizes = [1, 128], strides = [1, 1]} : vector<17x128xf32> to vector<1x128xf32>
    %309 = vector.broadcast %308 : vector<1x128xf32> to vector<32x128xf32>
    %310 = arith.mulf %309, %253 : vector<32x128xf32>
    %c416_180 = arith.constant 416 : index
    %c0_181 = arith.constant 0 : index
    %311 = vector.load %arg6[%c416_180, %c0_181] : memref<544x128xf32, #tpu.memory_space<vmem>>, vector<32x128xf32>
    tpu.vector_store %arg6[%c416_180, %c0_181], %310 {strides = array<i32>} : memref<544x128xf32, #tpu.memory_space<vmem>>, vector<32x128xf32>,
    %312 = vector.extract_strided_slice %255 {offsets = [14, 0], sizes = [1, 128], strides = [1, 1]} : vector<17x128xf32> to vector<1x128xf32>
    %313 = vector.broadcast %312 : vector<1x128xf32> to vector<32x128xf32>
    %314 = arith.mulf %313, %253 : vector<32x128xf32>
    %c448_182 = arith.constant 448 : index
    %c0_183 = arith.constant 0 : index
    %315 = vector.load %arg6[%c448_182, %c0_183] : memref<544x128xf32, #tpu.memory_space<vmem>>, vector<32x128xf32>
    tpu.vector_store %arg6[%c448_182, %c0_183], %314 {strides = array<i32>} : memref<544x128xf32, #tpu.memory_space<vmem>>, vector<32x128xf32>,
    %316 = vector.extract_strided_slice %255 {offsets = [15, 0], sizes = [1, 128], strides = [1, 1]} : vector<17x128xf32> to vector<1x128xf32>
    %317 = vector.broadcast %316 : vector<1x128xf32> to vector<32x128xf32>
    %318 = arith.mulf %317, %253 : vector<32x128xf32>
    %c480_184 = arith.constant 480 : index
    %c0_185 = arith.constant 0 : index
    %319 = vector.load %arg6[%c480_184, %c0_185] : memref<544x128xf32, #tpu.memory_space<vmem>>, vector<32x128xf32>
    tpu.vector_store %arg6[%c480_184, %c0_185], %318 {strides = array<i32>} : memref<544x128xf32, #tpu.memory_space<vmem>>, vector<32x128xf32>,
    %320 = vector.extract_strided_slice %255 {offsets = [16, 0], sizes = [1, 128], strides = [1, 1]} : vector<17x128xf32> to vector<1x128xf32>
    %321 = vector.broadcast %320 : vector<1x128xf32> to vector<32x128xf32>
    %322 = arith.mulf %321, %253 : vector<32x128xf32>
    %c512_186 = arith.constant 512 : index
    %c0_187 = arith.constant 0 : index
    %323 = vector.load %arg6[%c512_186, %c0_187] : memref<544x128xf32, #tpu.memory_space<vmem>>, vector<32x128xf32>
    tpu.vector_store %arg6[%c512_186, %c0_187], %322 {strides = array<i32>} : memref<544x128xf32, #tpu.memory_space<vmem>>, vector<32x128xf32>,
    %c1_188 = arith.constant 1 : index
    %c0_189 = arith.constant 0 : index
    %c0_190 = arith.constant 0 : index
    %324 = vector.load %arg0[%c1_188, %c0_189, %c0_190] : memref<2x32x544xf32, #tpu.memory_space<vmem>>, vector<1x32x544xf32>
    %325 = vector.shape_cast %324 : vector<1x32x544xf32> to vector<32x544xf32>
    %c0_191 = arith.constant 0 : index
    %c0_192 = arith.constant 0 : index
    %326 = vector.load %arg6[%c0_191, %c0_192] : memref<544x128xf32, #tpu.memory_space<vmem>>, vector<544x128xf32>
    %cst_193 = arith.constant dense<0.000000e+00> : vector<32x128xf32>
    %327 = tpu.matmul %325, %326, %cst_193 {dimension_numbers = #tpu.dot_dimension_numbers<[1], [0], [0], [1], [0, 0, 1, 1], [], []>} : vector<32x544xf32>, vector<544x128xf32>, vector<32x128xf32> -> vector<32x128xf32>
    %c1_194 = arith.constant 1 : index
    %c1_195 = arith.constant 1 : index
    %c0_196 = arith.constant 0 : index
    %c0_197 = arith.constant 0 : index
    %328 = vector.load %arg2[%c1_194, %c1_195, %c0_196, %c0_197] : memref<2x2x128x128xf32, #tpu.memory_space<vmem>>, vector<1x1x128x128xf32>
    %329 = vector.shape_cast %328 : vector<1x1x128x128xf32> to vector<128x128xf32>
    %cst_198 = arith.constant dense<0.000000e+00> : vector<32x128xf32>
    %330 = tpu.matmul %327, %329, %cst_198 {dimension_numbers = #tpu.dot_dimension_numbers<[1], [0], [0], [1], [0, 0, 1, 1], [], []>} : vector<32x128xf32>, vector<128x128xf32>, vector<32x128xf32> -> vector<32x128xf32>
    %c1_199 = arith.constant 1 : index
    %c1_200 = arith.constant 1 : index
    %c0_201 = arith.constant 0 : index
    %c0_202 = arith.constant 0 : index
    %331 = vector.load %arg3[%c1_199, %c1_200, %c0_201, %c0_202] : memref<2x2x1x128xf32, #tpu.memory_space<vmem>>, vector<1x1x1x128xf32>
    %332 = vector.shape_cast %331 : vector<1x1x1x128xf32> to vector<1x128xf32>
    %333 = vector.broadcast %332 : vector<1x128xf32> to vector<32x128xf32>
    %334 = arith.addf %330, %333 : vector<32x128xf32>
    %cst_203 = arith.constant 0.000000e+00 : f32
    %335 = vector.broadcast %cst_203 : f32 to vector<32x128xf32>
    %336 = arith.maximumf %334, %335 : vector<32x128xf32>
    %c1_204 = arith.constant 1 : index
    %c0_205 = arith.constant 0 : index
    %c0_206 = arith.constant 0 : index
    %337 = vector.load %arg5[%c1_204, %c0_205, %c0_206] : memref<2x32x128xf32, #tpu.memory_space<vmem>>, vector<1x32x128xf32>
    %338 = vector.shape_cast %337 : vector<1x32x128xf32> to vector<32x128xf32>
    %339 = vector.shape_cast %336 : vector<32x128xf32> to vector<1x32x128xf32>
    tpu.vector_store %arg5[%c1_204, %c0_205, %c0_206], %339 {strides = array<i32>} : memref<2x32x128xf32, #tpu.memory_space<vmem>>, vector<1x32x128xf32>,
    return
  }
}

</mosaic_0001>

<bundles_post_ra>
// kernel: moe_forward.1
= control target key start
LH: loop header
LB: loop body
LE: loop exit
PB: predicated region body
PF: predicated region fallthrough
CT: control target
= control target key end

     0   :  { %v27_v0 = vlaneseq  ;;  %vm319_vm0 = vcmask 261120   ;;  %s5297_s1 = inlined_call_operand.vmem [shape: f32[2,2,17,128], index: 1, kind: input, shape index: {}]   ;;  %s5298_s0 = inlined_call_operand.vmem [shape: f32[2,32,544], index: 0, kind: input, shape index: {}]   ;;  %s5299_s4 = inlined_call_operand.vmem [shape: f32[32,128], index: 4, kind: input, shape index: {}]   ;;  %s5300_s2 = inlined_call_operand.vmem [shape: f32[2,2,128,128], index: 2, kind: input, shape index: {}]   ;;  %s5301_s3 = inlined_call_operand.vmem [shape: f32[2,2,1,128], index: 3, kind: input, shape index: {}]   ;;  %s5302_s5 = inlined_call_operand.vmem [shape: f32[2,32,128], index: 5, kind: output, shape index: {}]  }
   0x1   :  { %v3997_v1 = vld [vmem:[%s5297_s1] sm:$0xff]  ;;  %v4004_v3 = vld [vmem:[%s5297_s1 + $0x8] sm:$0xff]  ;;  %v4014_v5 = vld [vmem:[%s5298_s0 + $0x18] sm:$0xff] }
   0x2   :  { %v3999_v2 = vshrl.u32 %v27_v0, 7  ;;  %v4009_v4 = vld [vmem:[%s5298_s0 + $0x8] sm:$0xff]  ;;  %481 = vmatprep.mubr.f32.mxu1 %v4014_v5  ;;  %v4033_v10 = vld [vmem:[%s5299_s4] sm:$0xff]  ;;  %v4051_v16 = vld [vmem:[%s5299_s4 + $0x10] sm:$0xff] }
   0x3   :  { %396 = vmatprep.mubr.f32.mxu0 %v4009_v4  ;;  %v4038_v11 = vld [vmem:[%s5299_s4 + $0x8] sm:$0xff]  ;;  %v4056_v17 = vld [vmem:[%s5299_s4 + $0x18] sm:$0xff] }
   0x4   :  { %v4017_v6 = vsub.s32 4, %v3999_v2  ;;  %v4020_v7 = vsub.s32 0, %v3999_v2  ;;  %v4023_v8 = vsub.s32 5, %v3999_v2  ;;  %v4026_v9 = vsub.s32 1, %v3999_v2 }
   0x5   :  { %v4081_v41 = vsub.s32 6, %v3999_v2  ;;  %v4086_v45 = vsub.s32 2, %v3999_v2 }
   0x6   :  { %v78_v12 = vrot.slane %v3997_v1, %v4017_v6  ;;  %v174_v13 = vrot.slane %v4004_v3, %v4017_v6  ;;  %v30_v14 = vrot.slane %v3997_v1, %v4020_v7  ;;  %v126_v15 = vrot.slane %v4004_v3, %v4020_v7 }
   0x7   :  { %v90_v18 = vrot.slane %v3997_v1, %v4023_v8  ;;  %v186_v19 = vrot.slane %v4004_v3, %v4023_v8  ;;  %v42_v20 = vrot.slane %v3997_v1, %v4026_v9  ;;  %v138_v21 = vrot.slane %v4004_v3, %v4026_v9 }
   0x8   :  { %v79_v22 = vmul.f32 %v78_v12, %v4033_v10  ;;  %v80_v23 = vmul.f32 %v78_v12, %v4038_v11  ;;  %v175_v24 = vmul.f32 %v174_v13, %v4033_v10  ;;  %v176_v25 = vmul.f32 %v174_v13, %v4038_v11 }
   0x9   :  { %v31_v26 = vmul.f32 %v30_v14, %v4033_v10  ;;  %v32_v27 = vmul.f32 %v30_v14, %v4038_v11  ;;  %v127_v28 = vmul.f32 %v126_v15, %v4033_v10  ;;  %v128_v29 = vmul.f32 %v126_v15, %v4038_v11 }
   0xa   :  { %v3548_v30 = vpack.c.bf16 %v80_v23, %v79_v22  ;;  %v3580_v31 = vpack.c.bf16 %v176_v25, %v175_v24  ;;  %v81_v32 = vmul.f32 %v78_v12, %v4051_v16  ;;  %v82_v33 = vmul.f32 %v78_v12, %v4056_v17 }
   0xb   :  { %v3550_v34 = vpack.c.bf16 %v32_v27, %v31_v26  ;;  %v3582_v35 = vpack.c.bf16 %v128_v29, %v127_v28  ;;  %v177_v36 = vmul.f32 %v174_v13, %v4051_v16  ;;  %v178_v37 = vmul.f32 %v174_v13, %v4056_v17 }
   0xc   :  { %3549 = vmatprep.subr.bf16.mxu0 %v3548_v30  ;;  %3581 = vmatprep.subr.bf16.mxu1 %v3580_v31  ;;  %v3552_v38 = vpack.c.bf16 %v82_v33, %v81_v32  ;;  %v33_v39 = vmul.f32 %v30_v14, %v4051_v16  ;;  %v34_v40 = vmul.f32 %v30_v14, %v4056_v17  ;;  %v4113_v26 = vsub.s32 7, %v3999_v2 }
   0xd   :  { %3551 = vmatpush3.bf16.msra.mxu0 %v3550_v34  ;;  %3583 = vmatpush3.bf16.msra.mxu1 %v3582_v35  ;;  %v3584_v42 = vpack.c.bf16 %v178_v37, %v177_v36  ;;  %v129_v43 = vmul.f32 %v126_v15, %v4051_v16  ;;  %v130_v44 = vmul.f32 %v126_v15, %v4056_v17  ;;  %v4119_v29 = vsub.s32 3, %v3999_v2 }
   0xe   :  { %3553 = vmatprep.subr.bf16.mxu0 %v3552_v38  ;;  %v3554_v46 = vpack.c.bf16 %v34_v40, %v33_v39  ;;  %v91_v47 = vmul.f32 %v90_v18, %v4033_v10  ;;  %v92_v48 = vmul.f32 %v90_v18, %v4038_v11  ;;  %v187_v49 = vmul.f32 %v186_v19, %v4033_v10 }
   0xf   :  { %3585 = vmatprep.subr.bf16.mxu1 %v3584_v42  ;;  %v3586_v50 = vpack.c.bf16 %v130_v44, %v129_v43  ;;  %v188_v51 = vmul.f32 %v186_v19, %v4038_v11  ;;  %v43_v52 = vmul.f32 %v42_v20, %v4033_v10  ;;  %v44_v53 = vmul.f32 %v42_v20, %v4038_v11 }
  0x10   :  { %v3556_v54 = vpack.c.bf16 %v92_v48, %v91_v47  ;;  %v139_v55 = vmul.f32 %v138_v21, %v4033_v10  ;;  %v140_v56 = vmul.f32 %v138_v21, %v4038_v11  ;;  %v93_v57 = vmul.f32 %v90_v18, %v4051_v16  ;;  %5318 = vst [vmem:[#allocation3_spill] sm:$0xff] %v4113_v26 }
  0x11   :  { %3555 = vmatpush3.bf16.msra.mxu0 %v3554_v46  ;;  %3587 = vmatpush3.bf16.msra.mxu1 %v3586_v50  ;;  %v3588_v58 = vpack.c.bf16 %v188_v51, %v187_v49  ;;  %v3558_v59 = vpack.c.bf16 %v44_v53, %v43_v52  ;;  %v94_v60 = vmul.f32 %v90_v18, %v4056_v17 }
  0x12   :  { %3557 = vmatprep.subr.bf16.mxu0 %v3556_v54  ;;  %v3590_v61 = vpack.c.bf16 %v140_v56, %v139_v55  ;;  %v189_v62 = vmul.f32 %v186_v19, %v4051_v16  ;;  %v190_v63 = vmul.f32 %v186_v19, %v4056_v17  ;;  %v45_v0 = vmul.f32 %v42_v20, %v4051_v16 }
  0x13   :  { %3589 = vmatprep.subr.bf16.mxu1 %v3588_v58  ;;  %v3560_v12 = vpack.c.bf16 %v94_v60, %v93_v57  ;;  %v46_v13 = vmul.f32 %v42_v20, %v4056_v17  ;;  %v141_v14 = vmul.f32 %v138_v21, %v4051_v16  ;;  %v142_v15 = vmul.f32 %v138_v21, %v4056_v17 }
  0x14   :  { %v3592_v22 = vpack.c.bf16 %v190_v63, %v189_v62  ;;  %v102_v18 = vrot.slane %v3997_v1, %v4081_v41  ;;  %v198_v23 = vrot.slane %v4004_v3, %v4081_v41  ;;  %v54_v19 = vrot.slane %v3997_v1, %v4086_v45  ;;  %5319 = vst [vmem:[#allocation4_spill] sm:$0xff] %v4119_v29 }
  0x15   :  { %3559 = vmatpush3.bf16.msra.mxu0 %v3558_v59  ;;  %3591 = vmatpush3.bf16.msra.mxu1 %v3590_v61  ;;  %v3562_v24 = vpack.c.bf16 %v46_v13, %v45_v0  ;;  %v3594_v25 = vpack.c.bf16 %v142_v15, %v141_v14  ;;  %v150_v20 = vrot.slane %v4004_v3, %v4086_v45  ;;  %v2748_v13 = vld [vmem:[%s5297_s1 + $0x10] ss:$0 sm:$0xff] }
  0x16   :  { %3561 = vmatprep.subr.bf16.mxu0 %v3560_v12  ;;  %3593 = vmatprep.subr.bf16.mxu1 %v3592_v22  ;;  %v103_v21 = vmul.f32 %v102_v18, %v4033_v10  ;;  %v104_v27 = vmul.f32 %v102_v18, %v4038_v11  ;;  %v199_v28 = vmul.f32 %v198_v23, %v4033_v10 }
  0x17   :  { %v200_v30 = vmul.f32 %v198_v23, %v4038_v11  ;;  %v55_v31 = vmul.f32 %v54_v19, %v4033_v10  ;;  %v56_v32 = vmul.f32 %v54_v19, %v4038_v11  ;;  %v151_v33 = vmul.f32 %v150_v20, %v4033_v10 }
  0x18   :  { %v3564_v34 = vpack.c.bf16 %v104_v27, %v103_v21  ;;  %v152_v35 = vmul.f32 %v150_v20, %v4038_v11  ;;  %v105_v36 = vmul.f32 %v102_v18, %v4051_v16  ;;  %v106_v37 = vmul.f32 %v102_v18, %v4056_v17  ;;  %v587_v27 = vld [vmem:[%s5300_s2] sm:$0xff] }
  0x19   :  { %3563 = vmatpush3.bf16.msra.mxu0 %v3562_v24  ;;  %3595 = vmatpush3.bf16.msra.mxu1 %v3594_v25  ;;  %v3596_v38 = vpack.c.bf16 %v200_v30, %v199_v28  ;;  %v3566_v2 = vpack.c.bf16 %v56_v32, %v55_v31  ;;  %v201_v39 = vmul.f32 %v198_v23, %v4051_v16  ;;  %v588_v28 = vld [vmem:[%s5300_s2 + $0x8] sm:$0xff] }
  0x1a   :  { %3565 = vmatprep.subr.bf16.mxu0 %v3564_v34  ;;  %v3598_v40 = vpack.c.bf16 %v152_v35, %v151_v33  ;;  %v3568_v42 = vpack.c.bf16 %v106_v37, %v105_v36  ;;  %v202_v43 = vmul.f32 %v198_v23, %v4056_v17  ;;  %v57_v44 = vmul.f32 %v54_v19, %v4051_v16  ;;  %v4174_v37 = vld [vmem:[%s5298_s0] sm:$0xff] }
  0x1b   :  { %3597 = vmatprep.subr.bf16.mxu1 %v3596_v38  ;;  %v58_v46 = vmul.f32 %v54_v19, %v4056_v17  ;;  %v153_v47 = vmul.f32 %v150_v20, %v4051_v16  ;;  %v154_v48 = vmul.f32 %v150_v20, %v4056_v17  ;;  %v114_v49 = vrot.slane %v3997_v1, %v4113_v26  ;;  %v4189_v38 = vld [vmem:[%s5298_s0 + $0x40] sm:$0xff] }
  0x1c   :  { %v3600_v50 = vpack.c.bf16 %v202_v43, %v201_v39  ;;  %v210_v51 = vrot.slane %v4004_v3, %v4113_v26  ;;  %v66_v52 = vrot.slane %v3997_v1, %v4119_v29  ;;  %v162_v53 = vrot.slane %v4004_v3, %v4119_v29  ;;  %v590_v39 = vld [vmem:[%s5300_s2 + $0x18] sm:$0xff] }
  0x1d   :  { %3567 = vmatpush3.bf16.msra.mxu0 %v3566_v2  ;;  %3599 = vmatpush3.bf16.msra.mxu1 %v3598_v40  ;;  %v3570_v54 = vpack.c.bf16 %v58_v46, %v57_v44  ;;  %v3602_v55 = vpack.c.bf16 %v154_v48, %v153_v47  ;;  %v115_v56 = vmul.f32 %v114_v49, %v4033_v10  ;;  %v589_v2 = vld [vmem:[%s5300_s2 + $0x10] sm:$0xff]  ;;  %v4203_v40 = vld [vmem:[%s5298_s0 + $0x28] sm:$0xff]  ;;  %v4214_v43 = vld [vmem:[%s5298_s0 + $0x58] sm:$0xff] }
  0x1e   :  { %3569 = vmatprep.subr.bf16.mxu0 %v3568_v42  ;;  %3601 = vmatprep.subr.bf16.mxu1 %v3600_v50  ;;  %v116_v57 = vmul.f32 %v114_v49, %v4038_v11  ;;  %v211_v58 = vmul.f32 %v210_v51, %v4033_v10  ;;  %v212_v59 = vmul.f32 %v210_v51, %v4038_v11  ;;  %v4208_v42 = vld [vmem:[%s5298_s0 + $0x38] sm:$0xff]  ;;  %v4219_v44 = vld [vmem:[%s5298_s0 + $0x68] sm:$0xff]  ;;  %v591_v47 = vld [vmem:[%s5300_s2 + $0x20] sm:$0xff] }
  0x1f   :  { %v67_v60 = vmul.f32 %v66_v52, %v4033_v10  ;;  %v68_v1 = vmul.f32 %v66_v52, %v4038_v11  ;;  %v163_v3 = vmul.f32 %v162_v53, %v4033_v10  ;;  %v164_v61 = vmul.f32 %v162_v53, %v4038_v11  ;;  %v592_v48 = vld [vmem:[%s5300_s2 + $0x28] sm:$0xff]  ;;  %v4239_v50 = vld [vmem:[%s5298_s0 + $0x60] sm:$0xff] }
  0x20   :  { %v3572_v62 = vpack.c.bf16 %v116_v57, %v115_v56  ;;  %v3604_v63 = vpack.c.bf16 %v212_v59, %v211_v58  ;;  %v117_v0 = vmul.f32 %v114_v49, %v4051_v16  ;;  %v118_v12 = vmul.f32 %v114_v49, %v4056_v17  ;;  %v4234_v49 = vld [vmem:[%s5298_s0 + $0x50] sm:$0xff]  ;;  %v4268_v56 = vld [vmem:[%s5298_s0 + $0x20] sm:$0xff]  ;;  %v4277_v57 = vld [vmem:[%s5298_s0 + $0x48] sm:$0xff] }
  0x21   :  { %3571 = vmatpush3.bf16.msra.mxu0 %v3570_v54  ;;  %3603 = vmatpush3.bf16.msra.mxu1 %v3602_v55  ;;  %v3574_v14 = vpack.c.bf16 %v68_v1, %v67_v60  ;;  %v3606_v15 = vpack.c.bf16 %v164_v61, %v163_v3  ;;  %v213_v22 = vmul.f32 %v210_v51, %v4051_v16  ;;  %v4258_v54 = vld [vmem:[%s5298_s0 + $0x78] sm:$0xff]  ;;  %v4263_v55 = vld [vmem:[%s5298_s0 + $0x88] sm:$0xff]  ;;  %v4282_v58 = vld [vmem:[%s5298_s0 + $0x70] sm:$0xff] }
  0x22   :  { %3573 = vmatprep.subr.bf16.mxu0 %v3572_v62  ;;  %3605 = vmatprep.subr.bf16.mxu1 %v3604_v63  ;;  %v3576_v18 = vpack.c.bf16 %v118_v12, %v117_v0  ;;  %v214_v23 = vmul.f32 %v210_v51, %v4056_v17  ;;  %v69_v19 = vmul.f32 %v66_v52, %v4051_v16  ;;  %v4244_v51 = vld [vmem:[%s5298_s0 + $0x80] sm:$0xff]  ;;  %v4291_v59 = vld [vmem:[%s5298_s0 + $0x98] sm:$0xff]  ;;  %v593_v60 = vld [vmem:[%s5300_s2 + $0x30] sm:$0xff] }
  0x23   :  { %v70_v24 = vmul.f32 %v66_v52, %v4056_v17  ;;  %v165_v25 = vmul.f32 %v162_v53, %v4051_v16  ;;  %v166_v20 = vmul.f32 %v162_v53, %v4056_v17  ;;  %v223_v21 = vmul.f32 %v2748_v13, %v4033_v10  ;;  %v4249_v52 = vld [vmem:[%s5298_s0 + $0x90] sm:$0xff]  ;;  %v594_v1 = vld [vmem:[%s5300_s2 + $0x38] sm:$0xff]  ;;  %v595_v61 = vld [vmem:[%s5300_s2 + $0x40] sm:$0xff] }
  0x24   :  { %v3608_v30 = vpack.c.bf16 %v214_v23, %v213_v22  ;;  %v224_v31 = vmul.f32 %v2748_v13, %v4038_v11  ;;  %v225_v34 = vmul.f32 %v2748_v13, %v4051_v16  ;;  %v226_v35 = vmul.f32 %v2748_v13, %v4056_v17  ;;  %v4179_v11 = vld [vmem:[%s5298_s0 + $0x10] sm:$0xff]  ;;  %v596_v62 = vld [vmem:[%s5300_s2 + $0x48] sm:$0xff]  ;;  %v598_v0 = vld [vmem:[%s5300_s2 + $0x58] sm:$0xff] }
  0x25   :  { %3575 = vmatpush3.bf16.msra.mxu0 %v3574_v14  ;;  %3607 = vmatpush3.bf16.msra.mxu1 %v3606_v15  ;;  %v3578_v32 = vpack.c.bf16 %v70_v24, %v69_v19  ;;  %v3610_v33 = vpack.c.bf16 %v166_v20, %v165_v25  ;;  %v3620_v36 = vpack.c.bf16 %v588_v28, %v587_v27  ;;  %v4184_v16 = vld [vmem:[%s5298_s0 + $0x30] sm:$0xff]  ;;  %v599_v13 = vld [vmem:[%s5300_s2 + $0x60] sm:$0xff]  ;;  %v600_v14 = vld [vmem:[%s5300_s2 + $0x68] sm:$0xff] }
  0x26   :  { %3577 = vmatprep.subr.bf16.mxu0 %v3576_v18  ;;  %3609 = vmatprep.subr.bf16.mxu1 %v3608_v30  ;;  %v3612_v10 = vpack.c.bf16 %v224_v31, %v223_v21  ;;  %v3616_v17 = vpack.c.bf16 %v226_v35, %v225_v34  ;;  %v3624_v46 = vpack.c.bf16 %v590_v39, %v589_v2  ;;  %v597_v63 = vld [vmem:[%s5300_s2 + $0x50] sm:$0xff]  ;;  %v602_v18 = vld [vmem:[%s5300_s2 + $0x78] sm:$0xff] }
  0x27   :  { %v3628_v53 = vpack.c.bf16 %v592_v48, %v591_v47  ;;  %v3632_v3 = vpack.c.bf16 %v594_v1, %v593_v60  ;;  %v3640_v12 = vpack.c.bf16 %v598_v0, %v597_v63  ;;  %v3644_v15 = vpack.c.bf16 %v600_v14, %v599_v13  ;;  %v601_v22 = vld [vmem:[%s5300_s2 + $0x70] sm:$0xff] }
  0x28   :  { %v3648_v23 = vpack.c.bf16 %v602_v18, %v601_v22 }
  0x29   :  { %3579 = vmatpush3.bf16.msra.mxu0 %v3578_v32  ;;  %3611 = vmatpush3.bf16.msra.mxu1 %v3610_v33 }
  0x2a   :  { %3613 = vmatprep.subr.bf16.mxu0 %v3612_v10  ;;  %3621 = vmatprep.subr.bf16.mxu1 %v3620_v36 }
  0x2c   :  { %397 = vmatmul.mubr.f32.vlgmr.msra.gmra.mrb[0].mxu0 %v4174_v37  ;;  %482 = vmatmul.mubr.f32.vlgmr.msra.gmra.mrb[0].mxu1 %v4179_v11 }
  0x2d   :  { %3615 = vmatpush3.bf16.msra.mxu0 %v3612_v10  ;;  %401 = vmatprep.mubr.f32.mxu0 %v4184_v16 }
  0x2e   :  { %486 = vmatprep.mubr.f32.mxu1 %v4189_v38  ;;  %3617 = vmatprep.subr.bf16.mxu0 %v3616_v17 }
  0x2f   :  { %3623 = vmatpush3.bf16.msra.mxu1 %v3620_v36 }
  0x30   :  { %402 = vmatmul.mubr.f32.gmra.mrb[2].mxu0 %v4203_v40  ;;  %487 = vmatmul.mubr.f32.gmra.mrb[2].mxu1 %v4208_v42 }
  0x31   :  { %406 = vmatprep.mubr.f32.mxu0 %v4214_v43  ;;  %491 = vmatprep.mubr.f32.mxu1 %v4219_v44 }
  0x32   :  { %3619 = vmatpush3.bf16.msra.mxu0 %v3616_v17  ;;  %3625 = vmatprep.subr.bf16.mxu1 %v3624_v46 }
  0x33   :  { %3627 = vmatpush3.bf16.msra.mxu1 %v3624_v46 }
  0x34   :  { %407 = vmatmul.mubr.f32.gmra.mrb[4].mxu0 %v4234_v49  ;;  %492 = vmatmul.mubr.f32.gmra.mrb[4].mxu1 %v4239_v50 }
  0x35   :  { %411 = vmatprep.mubr.f32.mxu0 %v4244_v51  ;;  %496 = vmatprep.mubr.f32.mxu1 %v4249_v52 }
  0x36   :  { %3629 = vmatprep.subr.bf16.mxu1 %v3628_v53 }
  0x37   :  { %3631 = vmatpush3.bf16.msra.mxu1 %v3628_v53 }
  0x38   :  { %412 = vmatmul.mubr.f32.gmra.mrb[6].mxu0 %v4258_v54  ;;  %497 = vmatmul.mubr.f32.gmra.mrb[6].mxu1 %v4263_v55 }
  0x39   :  { %3348 = vmatprep.mubr.msk.f32.mxu0 %vm319_vm0, %v4268_v56  ;;  %3633 = vmatprep.subr.bf16.mxu1 %v3632_v3 }
  0x3b   :  { %3635 = vmatpush3.bf16.msra.mxu1 %v3632_v3 }
  0x3c   :  { %3349 = vmatmul.mubr.msk.f32.vlgmr.msra.gmra.mrb[8].mxu0 %vm319_vm0, %v4277_v57 }
  0x3d   :  { %3351 = vmatprep.mubr.msk.f32.mxu0 %vm319_vm0, %v4282_v58 }
  0x40   :  { %3352 = vmatmul.mubr.msk.f32.gmra.mrb[10].mxu0 %vm319_vm0, %v4291_v59 }
  0x41   :  { %1071 = vmatprep.mubr.f32.mxu0 %v4009_v4  ;;  %v3636_v4 = vpack.c.bf16 %v596_v62, %v595_v61 }
  0x43   :  { %3637 = vmatprep.subr.bf16.mxu1 %v3636_v4 }
  0x44   :  { %3639 = vmatpush3.bf16.msra.mxu1 %v3636_v4 }
  0x45   :  { %3641 = vmatprep.subr.bf16.mxu1 %v3640_v12 }
  0x48   :  { %3643 = vmatpush3.bf16.msra.mxu1 %v3640_v12 }
  0x49   :  { %3645 = vmatprep.subr.bf16.mxu1 %v3644_v15 }
  0x4c   :  { %3647 = vmatpush3.bf16.msra.mxu1 %v3644_v15 }
  0x4d   :  { %3649 = vmatprep.subr.bf16.mxu1 %v3648_v23 }
  0x50   :  { %3651 = vmatpush3.bf16.msra.mxu1 %v3648_v23  ;;  %v2754_v23 = vld [vmem:[%s5297_s1 + $0x18] sm:$0xff] }
  0xff   :  { %v2908_v19 = vpop.f32.mrb[0].mxu0  ;;  %v2952_v24 = vpop.f32.mrb[0].mxu1 }
 0x100   :  { %v2909_v25 = vpop.f32.mrb[1].mxu0  ;;  %v2953_v20 = vpop.f32.mrb[1].mxu1 }
 0x101   :  { %v2910_v21 = vadd.f32 %v2909_v25, %v2908_v19  ;;  %v2954_v27 = vadd.f32 %v2953_v20, %v2952_v24  ;;  %v2755_v19 = vld [vmem:[%s5297_s1 + $0x20] sm:$0xff]  ;;  %v754_v20 = vrot.slane %v2754_v23, %v4017_v6 }
 0x102   :  { %v2753_v24 = vld [vmem:[%s5301_s3] ss:$0 sm:$0xff] }
 0x103   :  { %v2911_v28 = vpop.f32.mrb[2].mxu0  ;;  %v2955_v30 = vpop.f32.mrb[2].mxu1  ;;  %v484_v31 = vadd.f32 %v2954_v27, %v2910_v21  ;;  %v850_v21 = vrot.slane %v2755_v19, %v4017_v6  ;;  %v706_v27 = vrot.slane %v2754_v23, %v4020_v7 }
 0x104   :  { %v2912_v32 = vpop.f32.mrb[3].mxu0  ;;  %v2956_v33 = vpop.f32.mrb[3].mxu1 }
 0x105   :  { %v2913_v34 = vadd.f32 %v2912_v32, %v2911_v28  ;;  %v2957_v10 = vadd.f32 %v2956_v33, %v2955_v30  ;;  %v4344_v32 = vrot.slane %v2755_v19, %v4023_v8  ;;  %v4347_v33 = vrot.slane %v2754_v23, %v4026_v9 }
 0x107   :  { %v2914_v35 = vpop.f32.mrb[4].mxu0  ;;  %v2958_v36 = vpop.f32.mrb[4].mxu1  ;;  %v489_v17 = vadd.f32 %v2957_v10, %v2913_v34  ;;  %v4350_v10 = vrot.slane %v2755_v19, %v4026_v9 }
 0x108   :  { %v2915_v2 = vpop.f32.mrb[5].mxu0  ;;  %v2959_v39 = vpop.f32.mrb[5].mxu1 }
 0x109   :  { %v2916_v46 = vadd.f32 %v2915_v2, %v2914_v35  ;;  %v2960_v47 = vadd.f32 %v2959_v39, %v2958_v36  ;;  %v4353_v35 = vrot.slane %v2754_v23, %v4081_v41  ;;  %v4356_v36 = vrot.slane %v2755_v19, %v4081_v41 }
 0x10a   :  { %v4361_v2 = vrot.slane %v2754_v23, %v4086_v45  ;;  %v4364_v39 = vrot.slane %v2755_v19, %v4086_v45 }
 0x10b   :  { %v2917_v48 = vpop.f32.mrb[6].mxu0  ;;  %v2961_v53 = vpop.f32.mrb[6].mxu1  ;;  %v494_v60 = vadd.f32 %v2960_v47, %v2916_v46  ;;  %v4367_v46 = vrot.slane %v2754_v23, %v4113_v26 }
 0x10c   :  { %v2918_v1 = vpop.f32.mrb[7].mxu0  ;;  %v2962_v3 = vpop.f32.mrb[7].mxu1 }
 0x10d   :  { %v2919_v61 = vadd.f32 %v2918_v1, %v2917_v48  ;;  %v2963_v62 = vadd.f32 %v2962_v3, %v2961_v53  ;;  %v4372_v53 = vrot.slane %v2755_v19, %v4113_v26  ;;  %v4378_v1 = vrot.slane %v2755_v19, %v4119_v29 }
 0x10f   :  { %v3350_v4 = vpop.f32.mrb[8].mxu0  ;;  %v499_v63 = vadd.f32 %v2963_v62, %v2919_v61 }
 0x110   :  { %v574_v0 = vadd.f32 %v3350_v4, %v489_v17  ;;  %v568_v12 = vpop.f32.mrb[9].mxu0 }
 0x111   :  { %v569_v13 = vadd.f32 %v568_v12, %v484_v31  ;;  %v4341_v31 = vrot.slane %v2754_v23, %v4023_v8 }
 0x113   :  { %v3353_v14 = vpop.f32.mrb[10].mxu0  ;;  %3386 = vmatprep.mubr.f32.mxu1 %v569_v13 }
 0x114   :  { %v584_v15 = vadd.f32 %v3353_v14, %v499_v63  ;;  %v578_v22 = vpop.f32.mrb[11].mxu0  ;;  %3387 = vmatmul.mubr.f32.vlgmr.msra.gmra.mrb[8].mxu1 %v574_v0 }
 0x115   :  { %v579_v18 = vadd.f32 %v578_v22, %v494_v60  ;;  %v4375_v60 = vrot.slane %v2754_v23, %v4119_v29 }
 0x117   :  { %3389 = vmatprep.mubr.f32.mxu1 %v579_v18 }
 0x118   :  { %3390 = vmatmul.mubr.f32.gmra.mrb[10].mxu1 %v584_v15 }
 0x119   :  { %1156 = vmatprep.mubr.f32.mxu1 %v4014_v5  ;;  %v802_v5 = vrot.slane %v2755_v19, %v4020_v7 }
 0x1e7   :  { %v3388_v25 = vpop.f32.mrb[8].mxu1 }
 0x1e8   :  { %v682_v28 = vadd.f32 %v3388_v25, %v2753_v24  ;;  %v676_v30 = vpop.f32.mrb[9].mxu1 }
 0x1e9   :  { %v677_v34 = vadd.f32 %v2753_v24, %v676_v30 }
 0x1ea   :  { %v4358_v17 = vmax.f32 %v682_v28, 0.0 }
 0x1eb   :  { %v4369_v47 = vmax.f32 %v677_v34, 0.0  ;;  %v3391_v48 = vpop.f32.mrb[10].mxu1 }
 0x1ec   :  { %v692_v3 = vadd.f32 %v3391_v48, %v2753_v24  ;;  %v686_v61 = vpop.f32.mrb[11].mxu1  ;;  %v756_v62 = vmul.f32 %v754_v20, %v4358_v17  ;;  %v852_v4 = vmul.f32 %v850_v21, %v4358_v17  ;;  %v708_v63 = vmul.f32 %v706_v27, %v4358_v17 }
 0x1ed   :  { %v687_v0 = vadd.f32 %v2753_v24, %v686_v61  ;;  %v755_v12 = vmul.f32 %v754_v20, %v4369_v47  ;;  %v851_v13 = vmul.f32 %v850_v21, %v4369_v47  ;;  %v707_v14 = vmul.f32 %v706_v27, %v4369_v47 }
 0x1ee   :  { %v4386_v15 = vmax.f32 %v692_v3, 0.0  ;;  %v803_v22 = vmul.f32 %v802_v5, %v4369_v47  ;;  %v804_v18 = vmul.f32 %v802_v5, %v4358_v17  ;;  %v767_v23 = vmul.f32 %v4341_v31, %v4369_v47 }
 0x1ef   :  { %v4392_v19 = vmax.f32 %v687_v0, 0.0  ;;  %v3652_v25 = vpack.c.bf16 %v756_v62, %v755_v12  ;;  %v3684_v28 = vpack.c.bf16 %v852_v4, %v851_v13  ;;  %v3654_v24 = vpack.c.bf16 %v708_v63, %v707_v14 }
 0x1f0   :  { %v3686_v30 = vpack.c.bf16 %v804_v18, %v803_v22  ;;  %v758_v34 = vmul.f32 %v754_v20, %v4386_v15  ;;  %v854_v48 = vmul.f32 %v850_v21, %v4386_v15  ;;  %v710_v3 = vmul.f32 %v706_v27, %v4386_v15 }
 0x1f1   :  { %3653 = vmatprep.subr.bf16.mxu0 %v3652_v25  ;;  %3685 = vmatprep.subr.bf16.mxu1 %v3684_v28  ;;  %v757_v61 = vmul.f32 %v754_v20, %v4392_v19  ;;  %v853_v29 = vmul.f32 %v850_v21, %v4392_v19  ;;  %v709_v26 = vmul.f32 %v706_v27, %v4392_v19 }
 0x1f2   :  { %3655 = vmatpush3.bf16.msra.mxu0 %v3654_v24  ;;  %3687 = vmatpush3.bf16.msra.mxu1 %v3686_v30  ;;  %v805_v62 = vmul.f32 %v802_v5, %v4392_v19  ;;  %v806_v4 = vmul.f32 %v802_v5, %v4386_v15  ;;  %v768_v63 = vmul.f32 %v4341_v31, %v4358_v17 }
 0x1f3   :  { %v3656_v0 = vpack.c.bf16 %v758_v34, %v757_v61  ;;  %v3688_v12 = vpack.c.bf16 %v854_v48, %v853_v29  ;;  %v3658_v13 = vpack.c.bf16 %v710_v3, %v709_v26  ;;  %v863_v14 = vmul.f32 %v4344_v32, %v4369_v47 }
 0x1f4   :  { %v3690_v20 = vpack.c.bf16 %v806_v4, %v805_v62  ;;  %v3660_v22 = vpack.c.bf16 %v768_v63, %v767_v23  ;;  %v864_v21 = vmul.f32 %v4344_v32, %v4358_v17  ;;  %v719_v27 = vmul.f32 %v4347_v33, %v4369_v47 }
 0x1f5   :  { %3657 = vmatprep.subr.bf16.mxu0 %v3656_v0  ;;  %3689 = vmatprep.subr.bf16.mxu1 %v3688_v12  ;;  %v720_v5 = vmul.f32 %v4347_v33, %v4358_v17  ;;  %v815_v29 = vmul.f32 %v4350_v10, %v4369_v47  ;;  %v816_v26 = vmul.f32 %v4350_v10, %v4358_v17 }
 0x1f6   :  { %3659 = vmatpush3.bf16.msra.mxu0 %v3658_v13  ;;  %3691 = vmatpush3.bf16.msra.mxu1 %v3690_v20  ;;  %v3692_v18 = vpack.c.bf16 %v864_v21, %v863_v14  ;;  %v769_v23 = vmul.f32 %v4341_v31, %v4392_v19  ;;  %v770_v25 = vmul.f32 %v4341_v31, %v4386_v15 }
 0x1f7   :  { %3661 = vmatprep.subr.bf16.mxu0 %v3660_v22  ;;  %v3662_v28 = vpack.c.bf16 %v720_v5, %v719_v27  ;;  %v3694_v24 = vpack.c.bf16 %v816_v26, %v815_v29  ;;  %v865_v30 = vmul.f32 %v4344_v32, %v4392_v19  ;;  %v866_v34 = vmul.f32 %v4344_v32, %v4386_v15 }
 0x1f8   :  { %3693 = vmatprep.subr.bf16.mxu1 %v3692_v18  ;;  %v3664_v48 = vpack.c.bf16 %v770_v25, %v769_v23  ;;  %v721_v3 = vmul.f32 %v4347_v33, %v4392_v19  ;;  %v722_v61 = vmul.f32 %v4347_v33, %v4386_v15  ;;  %v817_v31 = vmul.f32 %v4350_v10, %v4392_v19 }
 0x1f9   :  { %v3696_v62 = vpack.c.bf16 %v866_v34, %v865_v30  ;;  %v818_v4 = vmul.f32 %v4350_v10, %v4386_v15  ;;  %v779_v63 = vmul.f32 %v4353_v35, %v4369_v47  ;;  %v780_v32 = vmul.f32 %v4353_v35, %v4358_v17 }
 0x1fa   :  { %3663 = vmatpush3.bf16.msra.mxu0 %v3662_v28  ;;  %3695 = vmatpush3.bf16.msra.mxu1 %v3694_v24  ;;  %v3666_v0 = vpack.c.bf16 %v722_v61, %v721_v3  ;;  %v875_v12 = vmul.f32 %v4356_v36, %v4369_v47  ;;  %v876_v33 = vmul.f32 %v4356_v36, %v4358_v17 }
 0x1fb   :  { %3665 = vmatprep.subr.bf16.mxu0 %v3664_v48  ;;  %3697 = vmatprep.subr.bf16.mxu1 %v3696_v62  ;;  %v3698_v13 = vpack.c.bf16 %v818_v4, %v817_v31  ;;  %v3668_v14 = vpack.c.bf16 %v780_v32, %v779_v63  ;;  %v731_v10 = vmul.f32 %v4361_v2, %v4369_v47 }
 0x1fc   :  { %v3700_v20 = vpack.c.bf16 %v876_v33, %v875_v12  ;;  %v732_v22 = vmul.f32 %v4361_v2, %v4358_v17  ;;  %v827_v21 = vmul.f32 %v4364_v39, %v4369_v47  ;;  %v828_v27 = vmul.f32 %v4364_v39, %v4358_v17 }
 0x1fd   :  { %v781_v5 = vmul.f32 %v4353_v35, %v4392_v19  ;;  %v782_v29 = vmul.f32 %v4353_v35, %v4386_v15  ;;  %v877_v26 = vmul.f32 %v4356_v36, %v4392_v19  ;;  %v878_v18 = vmul.f32 %v4356_v36, %v4386_v15 }
 0x1fe   :  { %3667 = vmatpush3.bf16.msra.mxu0 %v3666_v0  ;;  %3699 = vmatpush3.bf16.msra.mxu1 %v3698_v13  ;;  %v3670_v23 = vpack.c.bf16 %v732_v22, %v731_v10  ;;  %v3702_v25 = vpack.c.bf16 %v828_v27, %v827_v21  ;;  %v733_v28 = vmul.f32 %v4361_v2, %v4392_v19 }
 0x1ff   :  { %3669 = vmatprep.subr.bf16.mxu0 %v3668_v14  ;;  %3701 = vmatprep.subr.bf16.mxu1 %v3700_v20  ;;  %v3672_v24 = vpack.c.bf16 %v782_v29, %v781_v5  ;;  %v3704_v30 = vpack.c.bf16 %v878_v18, %v877_v26  ;;  %v734_v35 = vmul.f32 %v4361_v2, %v4386_v15  ;;  %v2757_v20 = vld [vmem:[%s5297_s1 + $0x28] ss:$0 sm:$0xff] }
 0x200   :  { %v829_v34 = vmul.f32 %v4364_v39, %v4392_v19  ;;  %v830_v36 = vmul.f32 %v4364_v39, %v4386_v15  ;;  %v791_v48 = vmul.f32 %v4367_v46, %v4369_v47  ;;  %v792_v3 = vmul.f32 %v4367_v46, %v4358_v17 }
 0x201   :  { %v3674_v61 = vpack.c.bf16 %v734_v35, %v733_v28  ;;  %v887_v31 = vmul.f32 %v4372_v53, %v4369_v47  ;;  %v888_v62 = vmul.f32 %v4372_v53, %v4358_v17  ;;  %v743_v2 = vmul.f32 %v4375_v60, %v4369_v47 }
 0x202   :  { %3671 = vmatpush3.bf16.msra.mxu0 %v3670_v23  ;;  %3703 = vmatpush3.bf16.msra.mxu1 %v3702_v25  ;;  %v3706_v4 = vpack.c.bf16 %v830_v36, %v829_v34  ;;  %v3676_v39 = vpack.c.bf16 %v792_v3, %v791_v48  ;;  %v744_v63 = vmul.f32 %v4375_v60, %v4358_v17 }
 0x203   :  { %3673 = vmatprep.subr.bf16.mxu0 %v3672_v24  ;;  %3705 = vmatprep.subr.bf16.mxu1 %v3704_v30  ;;  %v3708_v32 = vpack.c.bf16 %v888_v62, %v887_v31  ;;  %v839_v0 = vmul.f32 %v4378_v1, %v4369_v47  ;;  %v840_v12 = vmul.f32 %v4378_v1, %v4358_v17  ;;  %v2775_v31 = vld [vmem:[%s5300_s2 + $0xe8] sm:$0xff]  ;;  %v4593_v62 = vld [vmem:[%s5299_s4 + $0x10] sm:$0xff] }
 0x204   :  { %v3678_v33 = vpack.c.bf16 %v744_v63, %v743_v2  ;;  %v793_v13 = vmul.f32 %v4367_v46, %v4392_v19  ;;  %v794_v14 = vmul.f32 %v4367_v46, %v4386_v15  ;;  %v889_v10 = vmul.f32 %v4372_v53, %v4392_v19 }
 0x205   :  { %v3710_v22 = vpack.c.bf16 %v840_v12, %v839_v0  ;;  %v890_v21 = vmul.f32 %v4372_v53, %v4386_v15  ;;  %v745_v27 = vmul.f32 %v4375_v60, %v4392_v19  ;;  %v746_v5 = vmul.f32 %v4375_v60, %v4386_v15 }
 0x206   :  { %3675 = vmatpush3.bf16.msra.mxu0 %v3674_v61  ;;  %3707 = vmatpush3.bf16.msra.mxu1 %v3706_v4  ;;  %v3680_v46 = vpack.c.bf16 %v794_v14, %v793_v13  ;;  %v841_v29 = vmul.f32 %v4378_v1, %v4392_v19  ;;  %v842_v26 = vmul.f32 %v4378_v1, %v4386_v15  ;;  %v2774_v61 = vld [vmem:[%s5300_s2 + $0xe0] sm:$0xff]  ;;  %v4598_v4 = vld [vmem:[%s5299_s4 + $0x18] sm:$0xff] }
 0x207   :  { %3677 = vmatprep.subr.bf16.mxu0 %v3676_v39  ;;  %3709 = vmatprep.subr.bf16.mxu1 %v3708_v32  ;;  %v3712_v18 = vpack.c.bf16 %v890_v21, %v889_v10  ;;  %v3682_v23 = vpack.c.bf16 %v746_v5, %v745_v27  ;;  %v899_v53 = vmul.f32 %v2757_v20, %v4369_v47  ;;  %v2762_v47 = vld [vmem:[%s5300_s2 + $0x80] sm:$0xff]  ;;  %v2776_v10 = vld [vmem:[%s5300_s2 + $0xf0] sm:$0xff] }
 0x208   :  { %v3714_v25 = vpack.c.bf16 %v842_v26, %v841_v29  ;;  %v900_v28 = vmul.f32 %v2757_v20, %v4358_v17  ;;  %v901_v60 = vmul.f32 %v2757_v20, %v4392_v19  ;;  %v902_v24 = vmul.f32 %v2757_v20, %v4386_v15  ;;  %v2763_v17 = vld [vmem:[%s5300_s2 + $0x88] sm:$0xff]  ;;  %v2777_v20 = vld [vmem:[%s5300_s2 + $0xf8] sm:$0xff] }
 0x209   :  { %v3724_v1 = vpack.c.bf16 %v2763_v17, %v2762_v47  ;;  %v3748_v2 = vpack.c.bf16 %v2775_v31, %v2774_v61  ;;  %v3752_v21 = vpack.c.bf16 %v2777_v20, %v2776_v10 }
 0x20a   :  { %3679 = vmatpush3.bf16.msra.mxu0 %v3678_v33  ;;  %3711 = vmatpush3.bf16.msra.mxu1 %v3710_v22  ;;  %v3716_v30 = vpack.c.bf16 %v900_v28, %v899_v53  ;;  %v3720_v35 = vpack.c.bf16 %v902_v24, %v901_v60 }
 0x20b   :  { %3681 = vmatprep.subr.bf16.mxu0 %v3680_v46  ;;  %3713 = vmatprep.subr.bf16.mxu1 %v3712_v18 }
 0x20e   :  { %3683 = vmatpush3.bf16.msra.mxu0 %v3682_v23  ;;  %3715 = vmatpush3.bf16.msra.mxu1 %v3714_v25  ;;  %v4623_v25 = vld [vmem:[%s5297_s1 + $0x38] sm:$0xff] }
 0x20f   :  { %3717 = vmatprep.subr.bf16.mxu0 %v3716_v30  ;;  %v1535_v60 = vrot.slane %v4623_v25, %v4017_v6  ;;  %v1487_v47 = vrot.slane %v4623_v25, %v4020_v7 }
 0x211   :  { %1072 = vmatmul.mubr.f32.vlgmr.msra.gmra.mrb[12].mxu0 %v4174_v37  ;;  %1157 = vmatmul.mubr.f32.vlgmr.msra.gmra.mrb[12].mxu1 %v4179_v11  ;;  %v2764_v37 = vld [vmem:[%s5300_s2 + $0x90] sm:$0xff]  ;;  %v2765_v11 = vld [vmem:[%s5300_s2 + $0x98] sm:$0xff] }
 0x212   :  { %3719 = vmatpush3.bf16.msra.mxu0 %v3716_v30  ;;  %1076 = vmatprep.mubr.f32.mxu0 %v4184_v16  ;;  %v3728_v16 = vpack.c.bf16 %v2765_v11, %v2764_v37 }
 0x213   :  { %3721 = vmatprep.subr.bf16.mxu0 %v3720_v35  ;;  %1161 = vmatprep.mubr.f32.mxu1 %v4189_v38  ;;  %v2766_v38 = vld [vmem:[%s5300_s2 + $0xa0] sm:$0xff] }
 0x215   :  { %1077 = vmatmul.mubr.f32.gmra.mrb[14].mxu0 %v4203_v40  ;;  %1162 = vmatmul.mubr.f32.gmra.mrb[14].mxu1 %v4208_v42  ;;  %v2767_v40 = vld [vmem:[%s5300_s2 + $0xa8] sm:$0xff] }
 0x216   :  { %3723 = vmatpush3.bf16.msra.mxu0 %v3720_v35  ;;  %1081 = vmatprep.mubr.f32.mxu0 %v4214_v43  ;;  %v3732_v42 = vpack.c.bf16 %v2767_v40, %v2766_v38  ;;  %v2768_v43 = vld [vmem:[%s5300_s2 + $0xb0] sm:$0xff]  ;;  %v4642_v40 = vmul.f32 %v1535_v60, %v4593_v62 }
 0x217   :  { %1166 = vmatprep.mubr.f32.mxu1 %v4219_v44  ;;  %3725 = vmatprep.subr.bf16.mxu0 %v3724_v1  ;;  %v2769_v44 = vld [vmem:[%s5300_s2 + $0xb8] sm:$0xff] }
 0x219   :  { %1082 = vmatmul.mubr.f32.gmra.mrb[16].mxu0 %v4234_v49  ;;  %1167 = vmatmul.mubr.f32.gmra.mrb[16].mxu1 %v4239_v50  ;;  %v3736_v49 = vpack.c.bf16 %v2769_v44, %v2768_v43  ;;  %v2770_v50 = vld [vmem:[%s5300_s2 + $0xc0] sm:$0xff] }
 0x21a   :  { %1086 = vmatprep.mubr.f32.mxu0 %v4244_v51  ;;  %1171 = vmatprep.mubr.f32.mxu1 %v4249_v52  ;;  %v2771_v51 = vld [vmem:[%s5300_s2 + $0xc8] sm:$0xff] }
 0x21b   :  { %v3740_v52 = vpack.c.bf16 %v2771_v51, %v2770_v50 }
 0x21d   :  { %1087 = vmatmul.mubr.f32.gmra.mrb[18].mxu0 %v4258_v54  ;;  %1172 = vmatmul.mubr.f32.gmra.mrb[18].mxu1 %v4263_v55  ;;  %v2772_v54 = vld [vmem:[%s5300_s2 + $0xd0] sm:$0xff]  ;;  %v2773_v55 = vld [vmem:[%s5300_s2 + $0xd8] sm:$0xff] }
 0x21e   :  { %3400 = vmatprep.mubr.msk.f32.mxu0 %vm319_vm0, %v4268_v56  ;;  %v3744_v56 = vpack.c.bf16 %v2773_v55, %v2772_v54  ;;  %v4656_v54 = vmul.f32 %v1487_v47, %v4593_v62  ;;  %v4659_v55 = vmul.f32 %v1487_v47, %v4598_v4 }
 0x221   :  { %3401 = vmatmul.mubr.msk.f32.vlgmr.msra.gmra.mrb[20].mxu0 %vm319_vm0, %v4277_v57  ;;  %v4564_v57 = vld [vmem:[%s5299_s4] sm:$0xff] }
 0x222   :  { %3403 = vmatprep.mubr.msk.f32.mxu0 %vm319_vm0, %v4282_v58  ;;  %3727 = vmatpush3.bf16.msra.mxu0 %v3724_v1  ;;  %v4569_v58 = vld [vmem:[%s5299_s4 + $0x8] sm:$0xff]  ;;  %v1536_v17 = vmul.f32 %v1535_v60, %v4564_v57 }
 0x223   :  { %3729 = vmatprep.subr.bf16.mxu0 %v3728_v16  ;;  %v1537_v1 = vmul.f32 %v1535_v60, %v4569_v58  ;;  %v4639_v38 = vmul.f32 %v1487_v47, %v4569_v58 }
 0x225   :  { %3404 = vmatmul.mubr.msk.f32.gmra.mrb[22].mxu0 %vm319_vm0, %v4291_v59  ;;  %v4574_v59 = vld [vmem:[%s5297_s1 + $0x30] sm:$0xff]  ;;  %v3788_v43 = vpack.c.bf16 %v1537_v1, %v1536_v17 }
 0x226   :  { %3731 = vmatpush3.bf16.msra.mxu0 %v3728_v16  ;;  %v1439_v15 = vrot.slane %v4574_v59, %v4017_v6  ;;  %v1391_v19 = vrot.slane %v4574_v59, %v4020_v7  ;;  %v1451_v22 = vrot.slane %v4574_v59, %v4023_v8  ;;  %v1403_v27 = vrot.slane %v4574_v59, %v4026_v9 }
 0x227   :  { %3733 = vmatprep.subr.bf16.mxu0 %v3732_v42  ;;  %v1463_v11 = vrot.slane %v4574_v59, %v4081_v41  ;;  %v4636_v16 = vmul.f32 %v1487_v47, %v4564_v57  ;;  %v1415_v50 = vrot.slane %v4574_v59, %v4086_v45  ;;  %v1559_v47 = vrot.slane %v4623_v25, %v4081_v41 }
 0x228   :  { %v1440_v34 = vmul.f32 %v1439_v15, %v4564_v57  ;;  %v1441_v36 = vmul.f32 %v1439_v15, %v4569_v58  ;;  %v1392_v48 = vmul.f32 %v1391_v19, %v4564_v57  ;;  %v1393_v3 = vmul.f32 %v1391_v19, %v4569_v58 }
 0x229   :  { %v1442_v39 = vmul.f32 %v1439_v15, %v4593_v62  ;;  %v1443_v0 = vmul.f32 %v1439_v15, %v4598_v4  ;;  %v1394_v12 = vmul.f32 %v1391_v19, %v4593_v62  ;;  %v1395_v33 = vmul.f32 %v1391_v19, %v4598_v4 }
 0x22a   :  { %3735 = vmatpush3.bf16.msra.mxu0 %v3732_v42  ;;  %v3756_v63 = vpack.c.bf16 %v1441_v36, %v1440_v34  ;;  %v3758_v32 = vpack.c.bf16 %v1393_v3, %v1392_v48  ;;  %v1452_v5 = vmul.f32 %v1451_v22, %v4564_v57  ;;  %v1453_v46 = vmul.f32 %v1451_v22, %v4569_v58 }
 0x22b   :  { %3737 = vmatprep.subr.bf16.mxu0 %v3736_v49  ;;  %v3760_v13 = vpack.c.bf16 %v1443_v0, %v1442_v39  ;;  %v3762_v14 = vpack.c.bf16 %v1395_v33, %v1394_v12  ;;  %v1404_v29 = vmul.f32 %v1403_v27, %v4564_v57  ;;  %v1405_v26 = vmul.f32 %v1403_v27, %v4569_v58 }
 0x22c   :  { %3757 = vmatprep.subr.bf16.mxu1 %v3756_v63  ;;  %v3764_v18 = vpack.c.bf16 %v1453_v46, %v1452_v5  ;;  %v1454_v23 = vmul.f32 %v1451_v22, %v4593_v62  ;;  %v1455_v53 = vmul.f32 %v1451_v22, %v4598_v4  ;;  %v1406_v24 = vmul.f32 %v1403_v27, %v4593_v62  ;;  %v5320_v63 = vld [vmem:[#allocation3_spill] sm:$0xff]  ;;  %v5321_v46 = vld [vmem:[#allocation4_spill] sm:$0xff] }
 0x22d   :  { %3759 = vmatpush3.bf16.msra.mxu1 %v3758_v32  ;;  %v3766_v28 = vpack.c.bf16 %v1405_v26, %v1404_v29  ;;  %v1407_v30 = vmul.f32 %v1403_v27, %v4598_v4  ;;  %v4645_v42 = vmul.f32 %v1535_v60, %v4598_v4  ;;  %v1464_v44 = vmul.f32 %v1463_v11, %v4564_v57 }
 0x22e   :  { %3739 = vmatpush3.bf16.msra.mxu0 %v3736_v49  ;;  %3761 = vmatprep.subr.bf16.mxu1 %v3760_v13  ;;  %v3768_v35 = vpack.c.bf16 %v1455_v53, %v1454_v23  ;;  %v1465_v49 = vmul.f32 %v1463_v11, %v4569_v58  ;;  %v1416_v15 = vmul.f32 %v1415_v50, %v4564_v57 }
 0x22f   :  { %3741 = vmatprep.subr.bf16.mxu0 %v3740_v52  ;;  %v3770_v37 = vpack.c.bf16 %v1407_v30, %v1406_v24  ;;  %v1417_v19 = vmul.f32 %v1415_v50, %v4569_v58  ;;  %v1466_v34 = vmul.f32 %v1463_v11, %v4593_v62  ;;  %v1467_v48 = vmul.f32 %v1463_v11, %v4598_v4 }
 0x230   :  { %v1547_v3 = vrot.slane %v4623_v25, %v4023_v8  ;;  %v1418_v61 = vmul.f32 %v1415_v50, %v4593_v62  ;;  %v1499_v39 = vrot.slane %v4623_v25, %v4026_v9  ;;  %v1475_v32 = vrot.slane %v4574_v59, %v5320_v63 }
 0x231   :  { %3763 = vmatpush3.bf16.msra.mxu1 %v3762_v14  ;;  %v3774_v31 = vpack.c.bf16 %v1417_v19, %v1416_v15  ;;  %v3776_v0 = vpack.c.bf16 %v1467_v48, %v1466_v34  ;;  %v1427_v29 = vrot.slane %v4574_v59, %v5321_v46  ;;  %v1511_v11 = vrot.slane %v4623_v25, %v4086_v45 }
 0x232   :  { %3743 = vmatpush3.bf16.msra.mxu0 %v3740_v52  ;;  %3765 = vmatprep.subr.bf16.mxu1 %v3764_v18  ;;  %v4676_v12 = vmul.f32 %v1547_v3, %v4564_v57  ;;  %v4679_v33 = vmul.f32 %v1547_v3, %v4569_v58  ;;  %v4682_v13 = vmul.f32 %v1547_v3, %v4593_v62 }
 0x233   :  { %3745 = vmatprep.subr.bf16.mxu0 %v3744_v56  ;;  %v4685_v10 = vmul.f32 %v1499_v39, %v4564_v57  ;;  %v4688_v20 = vmul.f32 %v1499_v39, %v4569_v58  ;;  %v1476_v22 = vmul.f32 %v1475_v32, %v4564_v57  ;;  %v1477_v27 = vmul.f32 %v1475_v32, %v4569_v58 }
 0x234   :  { %v4695_v5 = vmul.f32 %v1547_v3, %v4598_v4  ;;  %v4702_v18 = vmul.f32 %v1499_v39, %v4593_v62  ;;  %v4705_v23 = vmul.f32 %v1499_v39, %v4598_v4  ;;  %v1478_v53 = vmul.f32 %v1475_v32, %v4593_v62 }
 0x235   :  { %3767 = vmatpush3.bf16.msra.mxu1 %v3766_v28  ;;  %v3780_v28 = vpack.c.bf16 %v1477_v27, %v1476_v22  ;;  %v1428_v24 = vmul.f32 %v1427_v29, %v4564_v57  ;;  %v1429_v59 = vmul.f32 %v1427_v29, %v4569_v58  ;;  %v1430_v1 = vmul.f32 %v1427_v29, %v4593_v62 }
 0x236   :  { %3747 = vmatpush3.bf16.msra.mxu0 %v3744_v56  ;;  %3769 = vmatprep.subr.bf16.mxu1 %v3768_v35  ;;  %v3772_v56 = vpack.c.bf16 %v1465_v49, %v1464_v44  ;;  %v1479_v35 = vmul.f32 %v1475_v32, %v4598_v4  ;;  %v4722_v44 = vmul.f32 %v1559_v47, %v4564_v57 }
 0x237   :  { %3749 = vmatprep.subr.bf16.mxu0 %v3748_v2  ;;  %v3782_v17 = vpack.c.bf16 %v1429_v59, %v1428_v24  ;;  %v4725_v49 = vmul.f32 %v1559_v47, %v4569_v58  ;;  %v4736_v15 = vmul.f32 %v1511_v11, %v4564_v57  ;;  %v4739_v19 = vmul.f32 %v1511_v11, %v4569_v58  ;;  %v2783_v59 = vld [vmem:[%s5297_s1 + $0x40] ss:$0 sm:$0xff]  ;;  %v4841_v24 = vld [vmem:[%s5298_s0 + $0x118] sm:$0xff] }
 0x238   :  { %v4743_v34 = vmul.f32 %v1559_v47, %v4598_v4  ;;  %v4748_v3 = vmul.f32 %v1511_v11, %v4593_v62  ;;  %5328 = vst [vmem:[#allocation9_spill] sm:$0xff] %v4841_v24 }
 0x239   :  { %3771 = vmatpush3.bf16.msra.mxu1 %v3770_v37  ;;  %v1431_v37 = vmul.f32 %v1427_v29, %v4598_v4  ;;  %v4772_v29 = vld [vmem:[%s5298_s0 + $0xa0] sm:$0xff] }
 0x23a   :  { %3751 = vmatpush3.bf16.msra.mxu0 %v3748_v2  ;;  %3773 = vmatprep.subr.bf16.mxu1 %v3772_v56  ;;  %v1419_v2 = vmul.f32 %v1415_v50, %v4598_v4  ;;  %v4730_v50 = vld [vmem:[%s5298_s0 + $0xa8] sm:$0xff]  ;;  %v4733_v56 = vmul.f32 %v1559_v47, %v4593_v62  ;;  %5322 = vst [vmem:[#allocation3_spill] sm:$0xff] %v4772_v29 }
 0x23b   :  { %3753 = vmatprep.subr.bf16.mxu0 %v3752_v21  ;;  %1757 = vmatprep.mubr.f32.mxu1 %v4730_v50 }
 0x23c   :  { %v3778_v14 = vpack.c.bf16 %v1419_v2, %v1418_v61  ;;  %v4751_v61 = vmul.f32 %v1511_v11, %v4598_v4 }
 0x23d   :  { %3775 = vmatpush3.bf16.msra.mxu1 %v3774_v31  ;;  %v3786_v31 = vpack.c.bf16 %v1431_v37, %v1430_v1  ;;  %v1584_v1 = vmul.f32 %v2783_v59, %v4564_v57  ;;  %v1585_v37 = vmul.f32 %v2783_v59, %v4569_v58 }
 0x23e   :  { %3755 = vmatpush3.bf16.msra.mxu0 %v3752_v21  ;;  %3777 = vmatprep.subr.bf16.mxu1 %v3776_v0  ;;  %v1571_v0 = vrot.slane %v4623_v25, %v5320_v63 }
 0x23f   :  { %3789 = vmatprep.subr.bf16.mxu0 %v3788_v43  ;;  %v3784_v43 = vpack.c.bf16 %v1479_v35, %v1478_v53 }
 0x240   :  { %v4764_v22 = vmul.f32 %v1571_v0, %v4564_v57  ;;  %v4767_v27 = vmul.f32 %v1571_v0, %v4569_v58  ;;  %v4791_v35 = vmul.f32 %v1571_v0, %v4593_v62  ;;  %v4794_v47 = vmul.f32 %v1571_v0, %v4598_v4  ;;  %v4813_v0 = vld [vmem:[%s5298_s0 + $0xc8] sm:$0xff] }
 0x241   :  { %3779 = vmatpush3.bf16.msra.mxu1 %v3778_v14  ;;  %v1523_v14 = vrot.slane %v4623_v25, %v5321_v46  ;;  %v4783_v25 = vld [vmem:[%s5298_s0 + $0xd0] sm:$0xff]  ;;  %5324 = vst [vmem:[#allocation5_spill] sm:$0xff] %v4813_v0 }
 0x242   :  { %3781 = vmatprep.subr.bf16.mxu1 %v3780_v28  ;;  %5323 = vst [vmem:[#allocation4_spill] sm:$0xff] %v4783_v25 }
 0x243   :  { %v4775_v53 = vmul.f32 %v1523_v14, %v4564_v57  ;;  %v4778_v28 = vmul.f32 %v1523_v14, %v4569_v58  ;;  %v4801_v11 = vmul.f32 %v1523_v14, %v4593_v62  ;;  %v3820_v57 = vpack.c.bf16 %v1585_v37, %v1584_v1  ;;  %v4818_v58 = vld [vmem:[%s5298_s0 + $0xf8] sm:$0xff] }
 0x244   :  { %5325 = vst [vmem:[#allocation6_spill] sm:$0xff] %v4818_v58  ;;  %v1586_v1 = vmul.f32 %v2783_v59, %v4593_v62  ;;  %v1587_v37 = vmul.f32 %v2783_v59, %v4598_v4  ;;  %v4846_v62 = vld [vmem:[%s5298_s0 + $0xc0] sm:$0xff]  ;;  %v4859_v59 = vld [vmem:[%s5298_s0 + $0x110] sm:$0xff] }
 0x245   :  { %3783 = vmatpush3.bf16.msra.mxu1 %v3782_v17  ;;  %5329 = vst [vmem:[#allocation10_spill] sm:$0xff] %v4846_v62  ;;  %5331 = vst [vmem:[#allocation12_spill] sm:$0xff] %v4859_v59 }
 0x246   :  { %3785 = vmatprep.subr.bf16.mxu1 %v3784_v43  ;;  %v4834_v43 = vld [vmem:[%s5298_s0 + $0x120] sm:$0xff]  ;;  %v3824_v17 = vpack.c.bf16 %v1587_v37, %v1586_v1 }
 0x247   :  { %5327 = vst [vmem:[#allocation8_spill] sm:$0xff] %v4834_v43 }
 0x249   :  { %3787 = vmatpush3.bf16.msra.mxu1 %v3786_v31  ;;  %v4807_v31 = vmul.f32 %v1523_v14, %v4598_v4  ;;  %v4827_v14 = vld [vmem:[%s5298_s0 + $0xf0] sm:$0xff]  ;;  %v4854_v4 = vld [vmem:[%s5298_s0 + $0xe8] sm:$0xff] }
 0x24a   :  { %3821 = vmatprep.subr.bf16.mxu1 %v3820_v57  ;;  %5326 = vst [vmem:[#allocation7_spill] sm:$0xff] %v4827_v14  ;;  %5330 = vst [vmem:[#allocation11_spill] sm:$0xff] %v4854_v4 }
 0x24c   :  { %1758 = vmatmul.mubr.f32.vlgmr.msra.gmra.mrb[20].mxu1 %v4772_v29 }
 0x24d   :  { %1762 = vmatprep.mubr.f32.mxu1 %v4783_v25  ;;  %3823 = vmatpush3.bf16.msra.mxu1 %v3820_v57 }
 0x24e   :  { %3825 = vmatprep.subr.bf16.mxu1 %v3824_v17 }
 0x250   :  { %1763 = vmatmul.mubr.f32.gmra.mrb[22].mxu1 %v4813_v0 }
 0x251   :  { %1767 = vmatprep.mubr.f32.mxu1 %v4818_v58  ;;  %3827 = vmatpush3.bf16.msra.mxu1 %v3824_v17  ;;  %v4868_v17 = vld [vmem:[%s5298_s0 + $0x138] sm:$0xff] }
 0x252   :  { %5332 = vst [vmem:[#allocation13_spill] sm:$0xff] %v4868_v17 }
 0x254   :  { %1768 = vmatmul.mubr.f32.gmra.mrb[24].mxu1 %v4827_v14 }
 0x255   :  { %1772 = vmatprep.mubr.f32.mxu1 %v4834_v43 }
 0x258   :  { %1773 = vmatmul.mubr.f32.gmra.mrb[26].mxu1 %v4841_v24 }
 0x259   :  { %3452 = vmatprep.mubr.msk.f32.mxu1 %vm319_vm0, %v4846_v62 }
 0x25c   :  { %3453 = vmatmul.mubr.msk.f32.vlgmr.msra.gmra.mrb[28].mxu1 %vm319_vm0, %v4854_v4 }
 0x25d   :  { %3455 = vmatprep.mubr.msk.f32.mxu1 %vm319_vm0, %v4859_v59 }
 0x260   :  { %3456 = vmatmul.mubr.msk.f32.gmra.mrb[30].mxu1 %vm319_vm0, %v4868_v17 }
 0x2e4   :  { %v3024_v57 = vpop.f32.mrb[12].mxu0  ;;  %v3068_v1 = vpop.f32.mrb[12].mxu1 }
 0x2e5   :  { %v3025_v37 = vpop.f32.mrb[13].mxu0  ;;  %v3069_v32 = vpop.f32.mrb[13].mxu1 }
 0x2e6   :  { %v3026_v39 = vadd.f32 %v3025_v37, %v3024_v57  ;;  %v3070_v2 = vadd.f32 %v3069_v32, %v3068_v1 }
 0x2e8   :  { %v3027_v48 = vpop.f32.mrb[14].mxu0  ;;  %v3071_v30 = vpop.f32.mrb[14].mxu1  ;;  %v1159_v60 = vadd.f32 %v3070_v2, %v3026_v39 }
 0x2e9   :  { %v3028_v26 = vpop.f32.mrb[15].mxu0  ;;  %v3072_v21 = vpop.f32.mrb[15].mxu1 }
 0x2ea   :  { %v3029_v36 = vadd.f32 %v3028_v26, %v3027_v48  ;;  %v3073_v52 = vadd.f32 %v3072_v21, %v3071_v30  ;;  %v5334_v48 = vpack.c.bf16 %v4645_v42, %v4642_v40  ;;  %v5338_v40 = vpack.c.bf16 %v4695_v5, %v4682_v13 }
 0x2eb   :  { %v5339_v42 = vpack.c.bf16 %v4705_v23, %v4702_v18  ;;  %v5344_v13 = vpack.c.bf16 %v4767_v27, %v4764_v22  ;;  %v5347_v5 = vpack.c.bf16 %v4807_v31, %v4801_v11  ;;  %v4926_v18 = vld [vmem:[%s5298_s0 + $0xb0] sm:$0xff]  ;;  %v4931_v23 = vld [vmem:[%s5298_s0 + $0xe0] sm:$0xff]  ;;  %v2811_v27 = vld [vmem:[%s5300_s2 + $0x118] sm:$0xff] }
 0x2ec   :  { %v3030_v51 = vpop.f32.mrb[16].mxu0  ;;  %v3074_v59 = vpop.f32.mrb[16].mxu1  ;;  %v1164_v4 = vadd.f32 %v3073_v52, %v3029_v36  ;;  %v2816_v11 = vld [vmem:[%s5300_s2 + $0x140] sm:$0xff] }
 0x2ed   :  { %v3031_v62 = vpop.f32.mrb[17].mxu0  ;;  %v3075_v24 = vpop.f32.mrb[17].mxu1 }
 0x2ee   :  { %v3032_v43 = vadd.f32 %v3031_v62, %v3030_v51  ;;  %v3076_v17 = vadd.f32 %v3075_v24, %v3074_v59  ;;  %v5333_v51 = vpack.c.bf16 %v4639_v38, %v4636_v16  ;;  %v5336_v16 = vpack.c.bf16 %v4679_v33, %v4676_v12  ;;  %v2814_v24 = vld [vmem:[%s5300_s2 + $0x130] sm:$0xff] }
 0x2ef   :  { %v5337_v38 = vpack.c.bf16 %v4688_v20, %v4685_v10  ;;  %v5342_v12 = vpack.c.bf16 %v4743_v34, %v4733_v56  ;;  %v5343_v33 = vpack.c.bf16 %v4751_v61, %v4748_v3  ;;  %v5345_v10 = vpack.c.bf16 %v4778_v28, %v4775_v53  ;;  %v4950_v56 = vld [vmem:[%s5298_s0 + $0x100] sm:$0xff]  ;;  %v2809_v3 = vld [vmem:[%s5300_s2 + $0x108] sm:$0xff]  ;;  %v2810_v61 = vld [vmem:[%s5300_s2 + $0x110] sm:$0xff] }
 0x2f0   :  { %v3033_v14 = vpop.f32.mrb[18].mxu0  ;;  %v3077_v58 = vpop.f32.mrb[18].mxu1  ;;  %v1169_v0 = vadd.f32 %v3076_v17, %v3032_v43  ;;  %v5346_v20 = vpack.c.bf16 %v4794_v47, %v4791_v35  ;;  %v2808_v34 = vld [vmem:[%s5300_s2 + $0x100] sm:$0xff]  ;;  %v2813_v53 = vld [vmem:[%s5300_s2 + $0x128] sm:$0xff]  ;;  %v2815_v35 = vld [vmem:[%s5300_s2 + $0x138] sm:$0xff] }
 0x2f1   :  { %v3034_v25 = vpop.f32.mrb[19].mxu0  ;;  %v3078_v57 = vpop.f32.mrb[19].mxu1  ;;  %v3828_v22 = vpack.c.bf16 %v2809_v3, %v2808_v34  ;;  %v3840_v47 = vpack.c.bf16 %v2815_v35, %v2814_v24  ;;  %v2817_v43 = vld [vmem:[%s5300_s2 + $0x148] sm:$0xff]  ;;  %v2818_v59 = vld [vmem:[%s5300_s2 + $0x150] sm:$0xff]  ;;  %v2819_v17 = vld [vmem:[%s5300_s2 + $0x158] sm:$0xff] }
 0x2f2   :  { %v3035_v32 = vadd.f32 %v3034_v25, %v3033_v14  ;;  %v3079_v1 = vadd.f32 %v3078_v57, %v3077_v58  ;;  %v4881_v25 = vld [vmem:[%s5298_s0 + $0xb8] sm:$0xff]  ;;  %v3844_v31 = vpack.c.bf16 %v2817_v43, %v2816_v11 }
 0x2f3   :  { %3829 = vmatprep.subr.bf16.mxu1 %v3828_v22 }
 0x2f4   :  { %v3402_v37 = vpop.f32.mrb[20].mxu0  ;;  %v1174_v2 = vadd.f32 %v3079_v1, %v3035_v32  ;;  %3831 = vmatpush3.bf16.msra.mxu1 %v3828_v22  ;;  %v3848_v32 = vpack.c.bf16 %v2819_v17, %v2818_v59 }
 0x2f5   :  { %v1249_v39 = vadd.f32 %v3402_v37, %v1164_v4  ;;  %v1243_v29 = vpop.f32.mrb[21].mxu0 }
 0x2f6   :  { %v1244_v26 = vadd.f32 %v1243_v29, %v1159_v60  ;;  %v5335_v60 = vpack.c.bf16 %v4659_v55, %v4656_v54  ;;  %v5340_v54 = vpack.c.bf16 %v4725_v49, %v4722_v44  ;;  %v5341_v55 = vpack.c.bf16 %v4739_v19, %v4736_v15  ;;  %v4938_v44 = vld [vmem:[%s5298_s0 + $0xd8] sm:$0xff]  ;;  %v4943_v49 = vld [vmem:[%s5298_s0 + $0x108] sm:$0xff]  ;;  %v4955_v15 = vld [vmem:[%s5298_s0 + $0x130] sm:$0xff] }
 0x2f7   :  { %v4962_v19 = vld [vmem:[%s5298_s0 + $0x128] sm:$0xff]  ;;  %v3832_v29 = vpack.c.bf16 %v2811_v27, %v2810_v61 }
 0x2f8   :  { %v3405_v21 = vpop.f32.mrb[22].mxu0  ;;  %3438 = vmatprep.mubr.f32.mxu0 %v1244_v26 }
 0x2f9   :  { %v1259_v30 = vadd.f32 %v3405_v21, %v1174_v2  ;;  %v1253_v52 = vpop.f32.mrb[23].mxu0  ;;  %3439 = vmatmul.mubr.f32.vlgmr.msra.gmra.mrb[24].mxu0 %v1249_v39  ;;  %3833 = vmatprep.subr.bf16.mxu1 %v3832_v29  ;;  %v2820_v2 = vld [vmem:[%s5300_s2 + $0x160] sm:$0xff]  ;;  %v2821_v39 = vld [vmem:[%s5300_s2 + $0x168] sm:$0xff] }
 0x2fa   :  { %v1254_v36 = vadd.f32 %v1253_v52, %v1169_v0  ;;  %3791 = vmatpush3.bf16.msra.mxu0 %v5333_v51  ;;  %3835 = vmatpush3.bf16.msra.mxu1 %v3832_v29  ;;  %v3852_v21 = vpack.c.bf16 %v2821_v39, %v2820_v2  ;;  %v2822_v51 = vld [vmem:[%s5300_s2 + $0x170] sm:$0xff]  ;;  %v2825_v39 = vld [vmem:[%s5301_s3 + $0x2] ss:$0 sm:$0xff] }
 0x2fb   :  { %3793 = vmatprep.subr.bf16.mxu0 %v5334_v48  ;;  %v2823_v48 = vld [vmem:[%s5300_s2 + $0x178] sm:$0xff] }
 0x2fc   :  { %3441 = vmatprep.mubr.f32.mxu0 %v1254_v36 }
 0x2fd   :  { %3442 = vmatmul.mubr.f32.gmra.mrb[26].mxu0 %v1259_v30 }
 0x2fe   :  { %3795 = vmatpush3.bf16.msra.mxu0 %v5335_v60  ;;  %1842 = vmatprep.mubr.f32.mxu0 %v4881_v25 }
 0x2ff   :  { %3797 = vmatprep.subr.bf16.mxu0 %v5336_v16  ;;  %v3856_v16 = vpack.c.bf16 %v2823_v48, %v2822_v51 }
 0x302   :  { %3799 = vmatpush3.bf16.msra.mxu0 %v5337_v38 }
 0x303   :  { %3801 = vmatprep.subr.bf16.mxu0 %v5338_v40 }
 0x306   :  { %3803 = vmatpush3.bf16.msra.mxu0 %v5339_v42 }
 0x307   :  { %3805 = vmatprep.subr.bf16.mxu0 %v5340_v54  ;;  %v2779_v54 = vld [vmem:[%s5301_s3 + $0x1] ss:$0 sm:$0xff] }
 0x30a   :  { %3807 = vmatpush3.bf16.msra.mxu0 %v5341_v55 }
 0x30b   :  { %3809 = vmatprep.subr.bf16.mxu0 %v5342_v12 }
 0x30e   :  { %3811 = vmatpush3.bf16.msra.mxu0 %v5343_v33 }
 0x30f   :  { %3813 = vmatprep.subr.bf16.mxu0 %v5344_v13 }
 0x312   :  { %3815 = vmatpush3.bf16.msra.mxu0 %v5345_v10 }
 0x313   :  { %3817 = vmatprep.subr.bf16.mxu0 %v5346_v20 }
 0x316   :  { %3819 = vmatpush3.bf16.msra.mxu0 %v5347_v5 }
 0x319   :  { %1843 = vmatmul.mubr.f32.vlgmr.msra.gmra.mrb[28].mxu0 %v4926_v18 }
 0x31a   :  { %1847 = vmatprep.mubr.f32.mxu0 %v4931_v23 }
 0x31d   :  { %1848 = vmatmul.mubr.f32.gmra.mrb[30].mxu0 %v4938_v44 }
 0x31e   :  { %1852 = vmatprep.mubr.f32.mxu0 %v4943_v49 }
 0x31f   :  { %v3140_v0 = vpop.f32.mrb[20].mxu1 }
 0x320   :  { %v3141_v58 = vpop.f32.mrb[21].mxu1 }
 0x321   :  { %1853 = vmatmul.mubr.f32.gmra.mrb[32].mxu0 %v4950_v56  ;;  %v3142_v14 = vadd.f32 %v3141_v58, %v3140_v0 }
 0x322   :  { %1857 = vmatprep.mubr.f32.mxu0 %v4955_v15 }
 0x323   :  { %v3143_v62 = vpop.f32.mrb[22].mxu1 }
 0x324   :  { %v3144_v4 = vpop.f32.mrb[23].mxu1 }
 0x325   :  { %1858 = vmatmul.mubr.f32.gmra.mrb[34].mxu0 %v4962_v19  ;;  %v3145_v57 = vadd.f32 %v3144_v4, %v3143_v62 }
 0x326   :  { %2434 = vmatprep.mubr.f32.mxu0 %v4730_v50  ;;  %v2812_v50 = vld [vmem:[%s5300_s2 + $0x120] sm:$0xff] }
 0x327   :  { %v3836_v28 = vpack.c.bf16 %v2813_v53, %v2812_v50  ;;  %v3146_v1 = vpop.f32.mrb[24].mxu1 }
 0x328   :  { %v3147_v37 = vpop.f32.mrb[25].mxu1 }
 0x329   :  { %3837 = vmatprep.subr.bf16.mxu1 %v3836_v28  ;;  %v3148_v26 = vadd.f32 %v3147_v37, %v3146_v1 }
 0x32a   :  { %3839 = vmatpush3.bf16.msra.mxu1 %v3836_v28 }
 0x32b   :  { %3841 = vmatprep.subr.bf16.mxu1 %v3840_v47  ;;  %v3149_v30 = vpop.f32.mrb[26].mxu1 }
 0x32c   :  { %v3150_v52 = vpop.f32.mrb[27].mxu1 }
 0x32d   :  { %v3151_v36 = vadd.f32 %v3150_v52, %v3149_v30 }
 0x32e   :  { %3843 = vmatpush3.bf16.msra.mxu1 %v3840_v47 }
 0x32f   :  { %3845 = vmatprep.subr.bf16.mxu1 %v3844_v31  ;;  %v3454_v60 = vpop.f32.mrb[28].mxu1 }
 0x330   :  { %v1929_v38 = vpop.f32.mrb[29].mxu1 }
 0x332   :  { %3847 = vmatpush3.bf16.msra.mxu1 %v3844_v31 }
 0x333   :  { %3849 = vmatprep.subr.bf16.mxu1 %v3848_v32  ;;  %v3457_v40 = vpop.f32.mrb[30].mxu1 }
 0x334   :  { %v1939_v42 = vpop.f32.mrb[31].mxu1 }
 0x336   :  { %3851 = vmatpush3.bf16.msra.mxu1 %v3848_v32 }
 0x337   :  { %3853 = vmatprep.subr.bf16.mxu1 %v3852_v21 }
 0x33a   :  { %3855 = vmatpush3.bf16.msra.mxu1 %v3852_v21 }
 0x33b   :  { %3857 = vmatprep.subr.bf16.mxu1 %v3856_v16 }
 0x33e   :  { %3859 = vmatpush3.bf16.msra.mxu1 %v3856_v16 }
 0x3cc   :  { %v3440_v55 = vpop.f32.mrb[24].mxu0 }
 0x3cd   :  { %v1359_v12 = vadd.f32 %v3440_v55, %v2779_v54  ;;  %v1353_v33 = vpop.f32.mrb[25].mxu0 }
 0x3ce   :  { %v1354_v13 = vadd.f32 %v2779_v54, %v1353_v33 }
 0x3cf   :  { %v1373_v10 = vmax.f32 %v1359_v12, 0.0 }
 0x3d0   :  { %v1372_v20 = vmax.f32 %v1354_v13, 0.0  ;;  %v3443_v5 = vpop.f32.mrb[26].mxu0 }
 0x3d1   :  { %1377 = vst [vmem:[%s5302_s5 + $0x8] sm:$0xff] %v1373_v10  ;;  %v1369_v34 = vadd.f32 %v3443_v5, %v2779_v54  ;;  %v1363_v3 = vpop.f32.mrb[27].mxu0 }
 0x3d2   :  { %1376 = vst [vmem:[%s5302_s5] sm:$0xff] %v1372_v20  ;;  %v1364_v61 = vadd.f32 %v2779_v54, %v1363_v3 }
 0x3d3   :  { %v1375_v22 = vmax.f32 %v1369_v34, 0.0 }
 0x3d4   :  { %v1374_v27 = vmax.f32 %v1364_v61, 0.0 }
 0x3d5   :  { %1379 = vst [vmem:[%s5302_s5 + $0x18] sm:$0xff] %v1375_v22 }
 0x3d6   :  { %1378 = vst [vmem:[%s5302_s5 + $0x10] sm:$0xff] %v1374_v27 }
 0x3ec   :  { %v3184_v29 = vpop.f32.mrb[28].mxu0 }
 0x3ed   :  { %v3185_v50 = vpop.f32.mrb[29].mxu0 }
 0x3ee   :  { %v3186_v53 = vadd.f32 %v3185_v50, %v3184_v29 }
 0x3f0   :  { %v3187_v28 = vpop.f32.mrb[30].mxu0  ;;  %v1845_v24 = vadd.f32 %v3186_v53, %v3142_v14  ;;  %v2826_v14 = vld [vmem:[%s5297_s1 + $0x48] sm:$0xff] }
 0x3f1   :  { %v3188_v35 = vpop.f32.mrb[31].mxu0  ;;  %v2117_v21 = vrot.slane %v2826_v14, %v4017_v6  ;;  %v2069_v52 = vrot.slane %v2826_v14, %v4020_v7  ;;  %v2129_v48 = vrot.slane %v2826_v14, %v4023_v8  ;;  %v5048_v16 = vrot.slane %v2826_v14, %v4026_v9 }
 0x3f2   :  { %v3189_v47 = vadd.f32 %v3188_v35, %v3187_v28  ;;  %v1930_v11 = vadd.f32 %v1929_v38, %v1845_v24  ;;  %v5062_v54 = vrot.slane %v2826_v14, %v4086_v45  ;;  %v5068_v55 = vrot.slane %v2826_v14, %v5320_v63 }
 0x3f3   :  { %v5076_v33 = vrot.slane %v2826_v14, %v5321_v46 }
 0x3f4   :  { %v1850_v43 = vadd.f32 %v3189_v47, %v3145_v57  ;;  %v3190_v31 = vpop.f32.mrb[32].mxu0  ;;  %3490 = vmatprep.mubr.f32.mxu1 %v1930_v11  ;;  %v2827_v57 = vld [vmem:[%s5297_s1 + $0x50] sm:$0xff] }
 0x3f5   :  { %v3191_v0 = vpop.f32.mrb[33].mxu0  ;;  %v2213_v30 = vrot.slane %v2827_v57, %v4017_v6  ;;  %v5054_v6 = vrot.slane %v2826_v14, %v4081_v41 }
 0x3f6   :  { %v1935_v58 = vadd.f32 %v3454_v60, %v1850_v43  ;;  %v3192_v62 = vadd.f32 %v3191_v0, %v3190_v31  ;;  %v5045_v60 = vrot.slane %v2827_v57, %v4023_v8  ;;  %v5065_v8 = vrot.slane %v2827_v57, %v4086_v45 }
 0x3f8   :  { %v3193_v4 = vpop.f32.mrb[34].mxu0  ;;  %3491 = vmatmul.mubr.f32.vlgmr.msra.gmra.mrb[32].mxu1 %v1935_v58  ;;  %v1855_v59 = vadd.f32 %v3192_v62, %v3148_v26 }
 0x3f9   :  { %v3194_v17 = vpop.f32.mrb[35].mxu0 }
 0x3fa   :  { %v3195_v32 = vadd.f32 %v3194_v17, %v3193_v4  ;;  %v1940_v1 = vadd.f32 %v1939_v42, %v1855_v59  ;;  %v5057_v42 = vrot.slane %v2827_v57, %v4081_v41  ;;  %v5079_v41 = vrot.slane %v2827_v57, %v5321_v46 }
 0x3fc   :  { %v1860_v37 = vadd.f32 %v3195_v32, %v3151_v36  ;;  %3493 = vmatprep.mubr.f32.mxu1 %v1940_v1 }
 0x3fe   :  { %v1945_v2 = vadd.f32 %v3457_v40, %v1860_v37  ;;  %v5051_v40 = vrot.slane %v2827_v57, %v4026_v9  ;;  %v5073_v9 = vrot.slane %v2827_v57, %v5320_v63 }
 0x400   :  { %3494 = vmatmul.mubr.f32.gmra.mrb[34].mxu1 %v1945_v2 }
 0x401   :  { %2519 = vmatprep.mubr.f32.mxu1 %v4881_v25  ;;  %v2165_v25 = vrot.slane %v2827_v57, %v4020_v7 }
 0x4cb   :  { %v3492_v26 = vpop.f32.mrb[32].mxu1 }
 0x4cc   :  { %v2045_v36 = vadd.f32 %v3492_v26, %v2825_v39  ;;  %v2039_v51 = vpop.f32.mrb[33].mxu1 }
 0x4cd   :  { %v2040_v38 = vadd.f32 %v2825_v39, %v2039_v51 }
 0x4ce   :  { %v5059_v7 = vmax.f32 %v2045_v36, 0.0 }
 0x4cf   :  { %v5070_v12 = vmax.f32 %v2040_v38, 0.0 }
 0x4d0   :  { %v2119_v13 = vmul.f32 %v2117_v21, %v5059_v7  ;;  %v2215_v10 = vmul.f32 %v2213_v30, %v5059_v7  ;;  %v2071_v45 = vmul.f32 %v2069_v52, %v5059_v7  ;;  %v2167_v20 = vmul.f32 %v2165_v25, %v5059_v7 }
 0x4d1   :  { %v2118_v5 = vmul.f32 %v2117_v21, %v5070_v12  ;;  %v2214_v34 = vmul.f32 %v2213_v30, %v5070_v12  ;;  %v2070_v63 = vmul.f32 %v2069_v52, %v5070_v12  ;;  %v2166_v3 = vmul.f32 %v2165_v25, %v5070_v12 }
 0x4d2   :  { %v2130_v61 = vmul.f32 %v2129_v48, %v5070_v12  ;;  %v2131_v46 = vmul.f32 %v2129_v48, %v5059_v7  ;;  %v2226_v22 = vmul.f32 %v5045_v60, %v5070_v12  ;;  %v2227_v27 = vmul.f32 %v5045_v60, %v5059_v7 }
 0x4d3   :  { %v3495_v29 = vpop.f32.mrb[34].mxu1  ;;  %v3860_v50 = vpack.c.bf16 %v2119_v13, %v2118_v5  ;;  %v3892_v53 = vpack.c.bf16 %v2215_v10, %v2214_v34  ;;  %v3862_v28 = vpack.c.bf16 %v2071_v45, %v2070_v63  ;;  %v3894_v24 = vpack.c.bf16 %v2167_v20, %v2166_v3 }
 0x4d4   :  { %v2055_v35 = vadd.f32 %v3495_v29, %v2825_v39  ;;  %v2049_v47 = vpop.f32.mrb[35].mxu1  ;;  %v3868_v11 = vpack.c.bf16 %v2131_v46, %v2130_v61  ;;  %v3900_v43 = vpack.c.bf16 %v2227_v27, %v2226_v22  ;;  %v2082_v31 = vmul.f32 %v5048_v16, %v5070_v12 }
 0x4d5   :  { %v2050_v0 = vadd.f32 %v2825_v39, %v2049_v47  ;;  %3861 = vmatprep.subr.bf16.mxu0 %v3860_v50  ;;  %3893 = vmatprep.subr.bf16.mxu1 %v3892_v53  ;;  %v2083_v58 = vmul.f32 %v5048_v16, %v5059_v7  ;;  %v2178_v62 = vmul.f32 %v5051_v40, %v5070_v12 }
 0x4d6   :  { %v5101_v4 = vmax.f32 %v2055_v35, 0.0  ;;  %3863 = vmatpush3.bf16.msra.mxu0 %v3862_v28  ;;  %3895 = vmatpush3.bf16.msra.mxu1 %v3894_v24  ;;  %v2179_v59 = vmul.f32 %v5051_v40, %v5059_v7  ;;  %v5107_v17 = vmul.f32 %v5054_v6, %v5070_v12  ;;  %v5111_v32 = vmul.f32 %v5054_v6, %v5059_v7 }
 0x4d7   :  { %v5113_v1 = vmax.f32 %v2050_v0, 0.0  ;;  %v3870_v37 = vpack.c.bf16 %v2083_v58, %v2082_v31  ;;  %v5117_v2 = vmul.f32 %v5057_v42, %v5070_v12  ;;  %v5121_v14 = vmul.f32 %v5057_v42, %v5059_v7 }
 0x4d8   :  { %v2121_v57 = vmul.f32 %v2117_v21, %v5101_v4  ;;  %v2217_v39 = vmul.f32 %v2213_v30, %v5101_v4  ;;  %v2073_v26 = vmul.f32 %v2069_v52, %v5101_v4  ;;  %v2169_v36 = vmul.f32 %v2165_v25, %v5101_v4 }
 0x4d9   :  { %v2120_v51 = vmul.f32 %v2117_v21, %v5113_v1  ;;  %v2216_v38 = vmul.f32 %v2213_v30, %v5113_v1  ;;  %v2072_v13 = vmul.f32 %v2069_v52, %v5113_v1  ;;  %v2168_v10 = vmul.f32 %v2165_v25, %v5113_v1 }
 0x4da   :  { %v3902_v45 = vpack.c.bf16 %v2179_v59, %v2178_v62  ;;  %v2132_v20 = vmul.f32 %v2129_v48, %v5113_v1  ;;  %v2133_v5 = vmul.f32 %v2129_v48, %v5101_v4  ;;  %v2228_v34 = vmul.f32 %v5045_v60, %v5113_v1 }
 0x4db   :  { %v3864_v63 = vpack.c.bf16 %v2121_v57, %v2120_v51  ;;  %v3896_v3 = vpack.c.bf16 %v2217_v39, %v2216_v38  ;;  %v3866_v61 = vpack.c.bf16 %v2073_v26, %v2072_v13  ;;  %v3898_v46 = vpack.c.bf16 %v2169_v36, %v2168_v10 }
 0x4dc   :  { %v3872_v22 = vpack.c.bf16 %v2133_v5, %v2132_v20  ;;  %v2229_v21 = vmul.f32 %v5045_v60, %v5101_v4  ;;  %v2084_v30 = vmul.f32 %v5048_v16, %v5113_v1  ;;  %v2085_v52 = vmul.f32 %v5048_v16, %v5101_v4 }
 0x4dd   :  { %3865 = vmatprep.subr.bf16.mxu0 %v3864_v63  ;;  %3897 = vmatprep.subr.bf16.mxu1 %v3896_v3  ;;  %v2180_v25 = vmul.f32 %v5051_v40, %v5113_v1  ;;  %v2181_v48 = vmul.f32 %v5051_v40, %v5101_v4  ;;  %v3876_v27 = vpack.c.bf16 %v5111_v32, %v5107_v17 }
 0x4de   :  { %3867 = vmatpush3.bf16.msra.mxu0 %v3866_v61  ;;  %3899 = vmatpush3.bf16.msra.mxu1 %v3898_v46  ;;  %v3904_v60 = vpack.c.bf16 %v2229_v21, %v2228_v34  ;;  %v3874_v29 = vpack.c.bf16 %v2085_v52, %v2084_v30  ;;  %v3908_v50 = vpack.c.bf16 %v5121_v14, %v5117_v2 }
 0x4df   :  { %3869 = vmatprep.subr.bf16.mxu0 %v3868_v11  ;;  %3901 = vmatprep.subr.bf16.mxu1 %v3900_v43  ;;  %v3906_v16 = vpack.c.bf16 %v2181_v48, %v2180_v25  ;;  %v2094_v53 = vmul.f32 %v5062_v54, %v5070_v12  ;;  %v2095_v28 = vmul.f32 %v5062_v54, %v5059_v7 }
 0x4e0   :  { %v2190_v40 = vmul.f32 %v5065_v8, %v5070_v12  ;;  %v2191_v24 = vmul.f32 %v5065_v8, %v5059_v7  ;;  %v2144_v35 = vmul.f32 %v5054_v6, %v5113_v1  ;;  %v2145_v47 = vmul.f32 %v5054_v6, %v5101_v4 }
 0x4e1   :  { %v3878_v11 = vpack.c.bf16 %v2095_v28, %v2094_v53  ;;  %v2240_v43 = vmul.f32 %v5057_v42, %v5113_v1  ;;  %v2241_v31 = vmul.f32 %v5057_v42, %v5101_v4  ;;  %v2096_v0 = vmul.f32 %v5062_v54, %v5113_v1  ;;  %v2858_v53 = vld [vmem:[%s5300_s2 + $0x1a0] sm:$0xff]  ;;  %v2859_v28 = vld [vmem:[%s5300_s2 + $0x1a8] sm:$0xff] }
 0x4e2   :  { %3871 = vmatpush3.bf16.msra.mxu0 %v3870_v37  ;;  %3903 = vmatpush3.bf16.msra.mxu1 %v3902_v45  ;;  %v3910_v58 = vpack.c.bf16 %v2191_v24, %v2190_v40  ;;  %v3880_v62 = vpack.c.bf16 %v2145_v47, %v2144_v35  ;;  %v2097_v59 = vmul.f32 %v5062_v54, %v5101_v4  ;;  %v2829_v45 = vld [vmem:[%s5297_s1 + $0x58] ss:$0 sm:$0xff]  ;;  %v5350_v40 = vld [vmem:[#allocation5_spill] sm:$0xff]  ;;  %v5352_v24 = vld [vmem:[#allocation7_spill] sm:$0xff] }
 0x4e3   :  { %3873 = vmatprep.subr.bf16.mxu0 %v3872_v22  ;;  %3905 = vmatprep.subr.bf16.mxu1 %v3904_v60  ;;  %v3912_v6 = vpack.c.bf16 %v2241_v31, %v2240_v43  ;;  %v2192_v17 = vmul.f32 %v5065_v8, %v5113_v1  ;;  %v2193_v32 = vmul.f32 %v5065_v8, %v5101_v4  ;;  %v2855_v60 = vld [vmem:[%s5300_s2 + $0x188] sm:$0xff]  ;;  %v5354_v47 = vld [vmem:[#allocation9_spill] sm:$0xff]  ;;  %v2862_v31 = vld [vmem:[%s5300_s2 + $0x1c0] sm:$0xff] }
 0x4e4   :  { %v3882_v42 = vpack.c.bf16 %v2097_v59, %v2096_v0  ;;  %v2154_v2 = vmul.f32 %v5068_v55, %v5070_v12  ;;  %v2155_v37 = vmul.f32 %v5068_v55, %v5059_v7  ;;  %v2250_v14 = vmul.f32 %v5073_v9, %v5070_v12  ;;  %v5353_v35 = vld [vmem:[#allocation8_spill] sm:$0xff]  ;;  %v2865_v59 = vld [vmem:[%s5300_s2 + $0x1d8] sm:$0xff] }
 0x4e5   :  { %v3914_v54 = vpack.c.bf16 %v2193_v32, %v2192_v17  ;;  %v2251_v57 = vmul.f32 %v5073_v9, %v5059_v7  ;;  %v2106_v39 = vmul.f32 %v5076_v33, %v5070_v12  ;;  %v2107_v8 = vmul.f32 %v5076_v33, %v5059_v7  ;;  %v2863_v0 = vld [vmem:[%s5300_s2 + $0x1c8] sm:$0xff]  ;;  %v2866_v17 = vld [vmem:[%s5300_s2 + $0x1e0] sm:$0xff] }
 0x4e6   :  { %3875 = vmatpush3.bf16.msra.mxu0 %v3874_v29  ;;  %3907 = vmatpush3.bf16.msra.mxu1 %v3906_v16  ;;  %v3884_v26 = vpack.c.bf16 %v2155_v37, %v2154_v2  ;;  %v2202_v36 = vmul.f32 %v5079_v41, %v5070_v12  ;;  %v2203_v51 = vmul.f32 %v5079_v41, %v5059_v7  ;;  %v5348_v29 = vld [vmem:[#allocation3_spill] sm:$0xff]  ;;  %v2867_v32 = vld [vmem:[%s5300_s2 + $0x1e8] sm:$0xff]  ;;  %v2868_v2 = vld [vmem:[%s5300_s2 + $0x1f0] sm:$0xff] }
 0x4e7   :  { %3877 = vmatprep.subr.bf16.mxu0 %v3876_v27  ;;  %3909 = vmatprep.subr.bf16.mxu1 %v3908_v50  ;;  %v3916_v38 = vpack.c.bf16 %v2251_v57, %v2250_v14  ;;  %v3886_v13 = vpack.c.bf16 %v2107_v8, %v2106_v39  ;;  %v2156_v10 = vmul.f32 %v5068_v55, %v5113_v1  ;;  %v5349_v50 = vld [vmem:[#allocation4_spill] sm:$0xff]  ;;  %v2869_v37 = vld [vmem:[%s5300_s2 + $0x1f8] sm:$0xff] }
 0x4e8   :  { %v3918_v20 = vpack.c.bf16 %v2203_v51, %v2202_v36  ;;  %v2157_v5 = vmul.f32 %v5068_v55, %v5101_v4  ;;  %v2252_v34 = vmul.f32 %v5073_v9, %v5113_v1  ;;  %v2253_v63 = vmul.f32 %v5073_v9, %v5101_v4 }
 0x4e9   :  { %v2108_v3 = vmul.f32 %v5076_v33, %v5113_v1  ;;  %v2109_v61 = vmul.f32 %v5076_v33, %v5101_v4  ;;  %v2204_v46 = vmul.f32 %v5079_v41, %v5113_v1  ;;  %v2205_v22 = vmul.f32 %v5079_v41, %v5101_v4 }
 0x4ea   :  { %3879 = vmatpush3.bf16.msra.mxu0 %v3878_v11  ;;  %3911 = vmatpush3.bf16.msra.mxu1 %v3910_v58  ;;  %v3888_v55 = vpack.c.bf16 %v2157_v5, %v2156_v10  ;;  %v3920_v21 = vpack.c.bf16 %v2253_v63, %v2252_v34  ;;  %v2262_v30 = vmul.f32 %v2829_v45, %v5070_v12  ;;  %v2854_v12 = vld [vmem:[%s5300_s2 + $0x180] sm:$0xff]  ;;  %v5357_v11 = vld [vmem:[#allocation12_spill] sm:$0xff] }
 0x4eb   :  { %3881 = vmatprep.subr.bf16.mxu0 %v3880_v62  ;;  %3913 = vmatprep.subr.bf16.mxu1 %v3912_v6  ;;  %v3890_v9 = vpack.c.bf16 %v2109_v61, %v2108_v3  ;;  %v3922_v52 = vpack.c.bf16 %v2205_v22, %v2204_v46  ;;  %v2263_v25 = vmul.f32 %v2829_v45, %v5059_v7  ;;  %v2864_v62 = vld [vmem:[%s5300_s2 + $0x1d0] sm:$0xff] }
 0x4ec   :  { %v2264_v33 = vmul.f32 %v2829_v45, %v5113_v1  ;;  %v2265_v48 = vmul.f32 %v2829_v45, %v5101_v4  ;;  %v3932_v7 = vpack.c.bf16 %v2855_v60, %v2854_v12  ;;  %v2856_v4 = vld [vmem:[%s5300_s2 + $0x190] sm:$0xff]  ;;  %v2857_v1 = vld [vmem:[%s5300_s2 + $0x198] sm:$0xff]  ;;  %v3948_v58 = vpack.c.bf16 %v2863_v0, %v2862_v31 }
 0x4ed   :  { %v3924_v27 = vpack.c.bf16 %v2263_v25, %v2262_v30  ;;  %v3936_v16 = vpack.c.bf16 %v2857_v1, %v2856_v4  ;;  %v3952_v6 = vpack.c.bf16 %v2865_v59, %v2864_v62  ;;  %v3960_v14 = vpack.c.bf16 %v2869_v37, %v2868_v2 }
 0x4ee   :  { %3883 = vmatpush3.bf16.msra.mxu0 %v3882_v42  ;;  %3915 = vmatpush3.bf16.msra.mxu1 %v3914_v54  ;;  %v3928_v41 = vpack.c.bf16 %v2265_v48, %v2264_v33  ;;  %v3956_v42 = vpack.c.bf16 %v2867_v32, %v2866_v17 }
 0x4ef   :  { %3885 = vmatprep.subr.bf16.mxu0 %v3884_v26  ;;  %3917 = vmatprep.subr.bf16.mxu1 %v3916_v38 }
 0x4f2   :  { %3887 = vmatpush3.bf16.msra.mxu0 %v3886_v13  ;;  %3919 = vmatpush3.bf16.msra.mxu1 %v3918_v20 }
 0x4f3   :  { %3889 = vmatprep.subr.bf16.mxu0 %v3888_v55  ;;  %3921 = vmatprep.subr.bf16.mxu1 %v3920_v21 }
 0x4f6   :  { %3891 = vmatpush3.bf16.msra.mxu0 %v3890_v9  ;;  %3923 = vmatpush3.bf16.msra.mxu1 %v3922_v52 }
 0x4f7   :  { %3925 = vmatprep.subr.bf16.mxu1 %v3924_v27  ;;  %3933 = vmatprep.subr.bf16.mxu0 %v3932_v7 }
 0x4f9   :  { %2435 = vmatmul.mubr.f32.vlgmr.msra.gmra.mrb[36].mxu0 %v5348_v29  ;;  %2520 = vmatmul.mubr.f32.vlgmr.msra.gmra.mrb[36].mxu1 %v4926_v18  ;;  %v5351_v18 = vld [vmem:[#allocation6_spill] sm:$0xff] }
 0x4fa   :  { %3927 = vmatpush3.bf16.msra.mxu1 %v3924_v27  ;;  %2439 = vmatprep.mubr.f32.mxu0 %v5349_v50 }
 0x4fb   :  { %3929 = vmatprep.subr.bf16.mxu1 %v3928_v41  ;;  %2524 = vmatprep.mubr.f32.mxu1 %v4931_v23  ;;  %v3940_v23 = vpack.c.bf16 %v2859_v28, %v2858_v53 }
 0x4fc   :  { %3935 = vmatpush3.bf16.msra.mxu0 %v3932_v7 }
 0x4fd   :  { %2440 = vmatmul.mubr.f32.gmra.mrb[38].mxu0 %v5350_v40  ;;  %2525 = vmatmul.mubr.f32.gmra.mrb[38].mxu1 %v4938_v44  ;;  %v5355_v44 = vld [vmem:[#allocation10_spill] sm:$0xff] }
 0x4fe   :  { %3931 = vmatpush3.bf16.msra.mxu1 %v3928_v41  ;;  %2444 = vmatprep.mubr.f32.mxu0 %v5351_v18 }
 0x4ff   :  { %2529 = vmatprep.mubr.f32.mxu1 %v4943_v49  ;;  %3937 = vmatprep.subr.bf16.mxu0 %v3936_v16  ;;  %v5356_v49 = vld [vmem:[#allocation11_spill] sm:$0xff] }
 0x500   :  { %3939 = vmatpush3.bf16.msra.mxu0 %v3936_v16  ;;  %v2871_v16 = vld [vmem:[%s5301_s3 + $0x3] ss:$0 sm:$0xff] }
 0x501   :  { %2445 = vmatmul.mubr.f32.gmra.mrb[40].mxu0 %v5352_v24  ;;  %2530 = vmatmul.mubr.f32.gmra.mrb[40].mxu1 %v4950_v56  ;;  %v5358_v56 = vld [vmem:[#allocation13_spill] sm:$0xff] }
 0x502   :  { %2449 = vmatprep.mubr.f32.mxu0 %v5353_v35  ;;  %2534 = vmatprep.mubr.f32.mxu1 %v4955_v15  ;;  %v2860_v15 = vld [vmem:[%s5300_s2 + $0x1b0] sm:$0xff] }
 0x503   :  { %3941 = vmatprep.subr.bf16.mxu0 %v3940_v23 }
 0x504   :  { %3943 = vmatpush3.bf16.msra.mxu0 %v3940_v23 }
 0x505   :  { %2450 = vmatmul.mubr.f32.gmra.mrb[42].mxu0 %v5354_v47  ;;  %2535 = vmatmul.mubr.f32.gmra.mrb[42].mxu1 %v4962_v19  ;;  %v2861_v19 = vld [vmem:[%s5300_s2 + $0x1b8] sm:$0xff] }
 0x506   :  { %3504 = vmatprep.mubr.msk.f32.mxu1 %vm319_vm0, %v5355_v44  ;;  %v3944_v43 = vpack.c.bf16 %v2861_v19, %v2860_v15 }
 0x508   :  { %3945 = vmatprep.subr.bf16.mxu0 %v3944_v43 }
 0x509   :  { %3505 = vmatmul.mubr.msk.f32.vlgmr.msra.gmra.mrb[44].mxu1 %vm319_vm0, %v5356_v49  ;;  %3947 = vmatpush3.bf16.msra.mxu0 %v3944_v43 }
 0x50a   :  { %3507 = vmatprep.mubr.msk.f32.mxu1 %vm319_vm0, %v5357_v11  ;;  %3949 = vmatprep.subr.bf16.mxu0 %v3948_v58 }
 0x50d   :  { %3508 = vmatmul.mubr.msk.f32.gmra.mrb[46].mxu1 %vm319_vm0, %v5358_v56  ;;  %3951 = vmatpush3.bf16.msra.mxu0 %v3948_v58 }
 0x50e   :  { %3953 = vmatprep.subr.bf16.mxu0 %v3952_v6 }
 0x511   :  { %3955 = vmatpush3.bf16.msra.mxu0 %v3952_v6 }
 0x512   :  { %3957 = vmatprep.subr.bf16.mxu0 %v3956_v42 }
 0x515   :  { %3959 = vmatpush3.bf16.msra.mxu0 %v3956_v42 }
 0x516   :  { %3961 = vmatprep.subr.bf16.mxu0 %v3960_v14 }
 0x519   :  { %3963 = vmatpush3.bf16.msra.mxu0 %v3960_v14 }
 0x5cc   :  { %v3256_v54 = vpop.f32.mrb[36].mxu0  ;;  %v3300_v57 = vpop.f32.mrb[36].mxu1 }
 0x5cd   :  { %v3257_v39 = vpop.f32.mrb[37].mxu0  ;;  %v3301_v8 = vpop.f32.mrb[37].mxu1 }
 0x5ce   :  { %v3258_v26 = vadd.f32 %v3257_v39, %v3256_v54  ;;  %v3302_v36 = vadd.f32 %v3301_v8, %v3300_v57 }
 0x5d0   :  { %v3259_v51 = vpop.f32.mrb[38].mxu0  ;;  %v3303_v38 = vpop.f32.mrb[38].mxu1  ;;  %v2522_v13 = vadd.f32 %v3302_v36, %v3258_v26 }
 0x5d1   :  { %v3260_v10 = vpop.f32.mrb[39].mxu0  ;;  %v3304_v45 = vpop.f32.mrb[39].mxu1 }
 0x5d2   :  { %v3261_v20 = vadd.f32 %v3260_v10, %v3259_v51  ;;  %v3305_v5 = vadd.f32 %v3304_v45, %v3303_v38 }
 0x5d4   :  { %v3262_v34 = vpop.f32.mrb[40].mxu0  ;;  %v3306_v63 = vpop.f32.mrb[40].mxu1  ;;  %v2527_v3 = vadd.f32 %v3305_v5, %v3261_v20 }
 0x5d5   :  { %v3263_v61 = vpop.f32.mrb[41].mxu0  ;;  %v3307_v46 = vpop.f32.mrb[41].mxu1 }
 0x5d6   :  { %v3264_v22 = vadd.f32 %v3263_v61, %v3262_v34  ;;  %v3308_v55 = vadd.f32 %v3307_v46, %v3306_v63 }
 0x5d8   :  { %v3265_v21 = vpop.f32.mrb[42].mxu0  ;;  %v3309_v30 = vpop.f32.mrb[42].mxu1  ;;  %v2532_v9 = vadd.f32 %v3308_v55, %v3264_v22 }
 0x5d9   :  { %v3266_v52 = vpop.f32.mrb[43].mxu0  ;;  %v3310_v25 = vpop.f32.mrb[43].mxu1 }
 0x5da   :  { %v3267_v33 = vadd.f32 %v3266_v52, %v3265_v21  ;;  %v3311_v48 = vadd.f32 %v3310_v25, %v3309_v30 }
 0x5dc   :  { %v3506_v27 = vpop.f32.mrb[44].mxu1  ;;  %v2537_v41 = vadd.f32 %v3311_v48, %v3267_v33 }
 0x5dd   :  { %v2612_v12 = vadd.f32 %v3506_v27, %v2527_v3  ;;  %v2606_v60 = vpop.f32.mrb[45].mxu1 }
 0x5de   :  { %v2607_v7 = vadd.f32 %v2606_v60, %v2522_v13 }
 0x5e0   :  { %v3509_v4 = vpop.f32.mrb[46].mxu1  ;;  %3542 = vmatprep.mubr.f32.mxu0 %v2607_v7 }
 0x5e1   :  { %v2622_v1 = vadd.f32 %v3509_v4, %v2537_v41  ;;  %v2616_v29 = vpop.f32.mrb[47].mxu1  ;;  %3543 = vmatmul.mubr.f32.vlgmr.msra.gmra.mrb[44].mxu0 %v2612_v12 }
 0x5e2   :  { %v2617_v50 = vadd.f32 %v2616_v29, %v2532_v9 }
 0x5e4   :  { %3545 = vmatprep.mubr.f32.mxu0 %v2617_v50 }
 0x5e5   :  { %3546 = vmatmul.mubr.f32.gmra.mrb[46].mxu0 %v2622_v1 }
 0x6b4   :  { %v3544_v53 = vpop.f32.mrb[44].mxu0 }
 0x6b5   :  { %v2722_v28 = vadd.f32 %v3544_v53, %v2871_v16  ;;  %v2716_v40 = vpop.f32.mrb[45].mxu0 }
 0x6b6   :  { %v2717_v18 = vadd.f32 %v2871_v16, %v2716_v40 }
 0x6b7   :  { %v2736_v23 = vmax.f32 %v2722_v28, 0.0 }
 0x6b8   :  { %v2735_v24 = vmax.f32 %v2717_v18, 0.0  ;;  %v3547_v35 = vpop.f32.mrb[46].mxu0 }
 0x6b9   :  { %2873 = vst [vmem:[%s5302_s5 + $0x28] sm:$0xff] %v2736_v23  ;;  %v2732_v47 = vadd.f32 %v3547_v35, %v2871_v16  ;;  %v2726_v44 = vpop.f32.mrb[47].mxu0 }
 0x6ba   :  { %2872 = vst [vmem:[%s5302_s5 + $0x20] sm:$0xff] %v2735_v24  ;;  %v2727_v49 = vadd.f32 %v2871_v16, %v2726_v44 }
 0x6bb   :  { %v2738_v11 = vmax.f32 %v2732_v47, 0.0 }
 0x6bc   :  { %v2737_v56 = vmax.f32 %v2727_v49, 0.0 }
 0x6bd   :  { %2875 = vst [vmem:[%s5302_s5 + $0x38] sm:$0xff] %v2738_v11 }
 0x6be   :  { %2874 = vst [vmem:[%s5302_s5 + $0x30] sm:$0xff] %v2737_v56 }

</bundles_post_ra>
